<compile_context>
chip_gen: v7x
topology: tpu7x:2x2x1
jax: 0.10.0
libtpu: 0.0.40
codegen_flags: <defaults>
</compile_context>

<pallas_src>
import functools
import numpy as np

import jax
import jax.numpy as jnp
from jax import lax
from jax.experimental import pallas as pl
from jax.experimental.pallas import tpu as pltpu


# ----------------------------------------------------------------------------
# In-kernel helpers
# ----------------------------------------------------------------------------
def _layer_norm(z, gamma, beta, eps=1e-6):
    # matches reference: (z - mean) / (unbiased_std + eps) * gamma + beta
    d = z.shape[-1]
    mean = jnp.mean(z, axis=-1, keepdims=True)
    var = jnp.sum((z - mean) ** 2, axis=-1, keepdims=True) / (d - 1)
    std = jnp.sqrt(var)
    return gamma * ((z - mean) / (std + eps)) + beta


# ----------------------------------------------------------------------------
# Fused decoder stack kernel: all layers in one pallas_call.
# Grid = (batch_blocks "parallel", layer "arbitrary").
# Activation is resident in o_ref across the layer sweep (constant index_map).
# ----------------------------------------------------------------------------
def fused_decoder_kernel(x0_ref, pad_ref,
                         wq_ref, wk_ref, wv_ref, wo_ref, bo_ref,
                         g1_ref, b1_ref,
                         w1_ref, c1_ref, w2_ref, c2_ref,
                         g2_ref, b2_ref,
                         o_ref,
                         mask_sc, ctx_sc,
                         *, Bb, L, n_heads, d_k, d_v):
    layer = pl.program_id(1)
    M = Bb * L

    @pl.when(layer == 0)
    def _():
        # Load the embeddings into the (VMEM-resident) output block once,
        # and build the (Bb, L, L) mask once per batch block:
        # causal (col > row) OR key-is-pad.
        o_ref[...] = x0_ref[...]
        row = lax.broadcasted_iota(jnp.int32, (L, L), 0)
        col = lax.broadcasted_iota(jnp.int32, (L, L), 1)
        causal = (col > row).astype(jnp.float32)                  # (L, L)
        padk = (pad_ref[...][:, 0, :] > 0.5).astype(jnp.float32)  # (Bb, L)
        mask_sc[...] = jnp.maximum(causal[None, :, :], padk[:, None, :])

    x = o_ref[...]                              # (M, D) f32 activation
    xb = x.astype(jnp.bfloat16)
    mask = mask_sc[...] > 0.5                   # (Bb, L, L) bool

    # per-layer params (leading layer axis of the block is size 1)
    bo = bo_ref[0]                              # (1, D) f32
    g1, b1 = g1_ref[0], b1_ref[0]
    w1, c1 = w1_ref[0], c1_ref[0]
    w2, c2 = w2_ref[0], c2_ref[0]
    g2, b2 = g2_ref[0], b2_ref[0]

    scale = jnp.float32(1.0 / float(np.sqrt(d_k)))

    # --- fused, lane-dense QKV projections: one matmul each, N = H*d_k / H*d_v
    q_all = jnp.dot(xb, wq_ref[0], preferred_element_type=jnp.float32)  # (M, H*dk)
    k_all = jnp.dot(xb, wk_ref[0], preferred_element_type=jnp.float32)  # (M, H*dk)
    v_all = jnp.dot(xb, wv_ref[0], preferred_element_type=jnp.float32)  # (M, H*dv)

    # --- per-head attention (static unroll; H small at toy sizes) ---
    for h in range(n_heads):
        q3 = q_all[:, h * d_k:(h + 1) * d_k].reshape(Bb, L, d_k)
        k3 = k_all[:, h * d_k:(h + 1) * d_k].reshape(Bb, L, d_k)
        v3 = v_all[:, h * d_v:(h + 1) * d_v].reshape(Bb, L, d_v)

        s = jnp.einsum('bqd,bkd->bqk',
                       q3.astype(jnp.bfloat16), k3.astype(jnp.bfloat16),
                       preferred_element_type=jnp.float32) * scale       # (Bb,L,L)
        s = jnp.where(mask, jnp.float32(-1e9), s)                        # masked_fill
        s = s - jnp.max(s, axis=-1, keepdims=True)
        p = jnp.exp(s)
        p = p * pl.reciprocal(jnp.sum(p, axis=-1, keepdims=True), approx=True)

        ctx = jnp.einsum('bqk,bkd->bqd',
                         p.astype(jnp.bfloat16), v3.astype(jnp.bfloat16),
                         preferred_element_type=jnp.float32)             # (Bb,L,dv)
        # contiguous (M, H*dv) context so the output projection is one matmul
        ctx_sc[:, h * d_v:(h + 1) * d_v] = ctx.reshape(M, d_v)

    # --- single lane-dense output projection over all heads ---
    attn = jnp.dot(ctx_sc[...].astype(jnp.bfloat16), wo_ref[0],
                   preferred_element_type=jnp.float32) + bo
    y1 = _layer_norm(x + attn, g1, b1)

    # --- position-wise FFN: conv1d(kernel_size=1) == per-position matmul ---
    h1 = jnp.maximum(
        jnp.dot(y1.astype(jnp.bfloat16), w1,
                preferred_element_type=jnp.float32) + c1, 0.0)
    h2 = jnp.dot(h1.astype(jnp.bfloat16), w2,
                 preferred_element_type=jnp.float32) + c2
    y2 = _layer_norm(y1 + h2, g2, b2)

    o_ref[...] = y2     # carry to next layer in VMEM; HBM writeback at the end


def lm_decoder_stack(x0, pad3, P, *, n_heads, d_k, d_v, batch_block=1):
    M, D = x0.shape                      # M = B*L, batch folded into rows
    B = pad3.shape[0]
    L = pad3.shape[2]
    n_layers = P['wq'].shape[0]
    Bb = batch_block
    assert B % Bb == 0 and M == B * L
    Mb = Bb * L

    kernel = functools.partial(fused_decoder_kernel, Bb=Bb, L=L,
                               n_heads=n_heads, d_k=d_k, d_v=d_v)

    weights = (P['wq'], P['wk'], P['wv'], P['wo'], P['bo'],
               P['ln1_g'], P['ln1_b'],
               P['w1'], P['b1'], P['w2'], P['b2'],
               P['ln2_g'], P['ln2_b'])

    def _w_spec(arr):
        nd = arr.ndim
        blk = (1,) + arr.shape[1:]
        return pl.BlockSpec(blk, lambda b, l, _nd=nd: (l,) + (0,) * (_nd - 1))

    # explicit VMEM budget: io blocks + double-buffered layer weights + scratch
    def _blk_bytes(a):
        return int(np.prod((1,) + a.shape[1:])) * a.dtype.itemsize
    per_layer_w = sum(_blk_bytes(w) for w in weights)
    need = (4 * Mb * D * 4                      # x0 + resident output (2 bufs each)
            + 2 * Bb * L * 4                    # pad blocks
            + 2 * per_layer_w                   # double-buffered layer weights
            + Bb * L * L * 4                    # mask scratch
            + Mb * n_heads * d_v * 4)           # ctx scratch
    vmem_limit = int(min(max(int(need * 1.5), 32 * 1024 * 1024),
                         100 * 1024 * 1024))

    return pl.pallas_call(
        kernel,
        out_shape=jax.ShapeDtypeStruct((M, D), jnp.float32),
        grid=(B // Bb, n_layers),
        in_specs=[pl.BlockSpec((Mb, D), lambda b, l: (b, 0)),      # activations
                  pl.BlockSpec((Bb, 1, L), lambda b, l: (b, 0, 0))]  # pad indicator
                 + [_w_spec(w) for w in weights],                  # streamed per layer
        out_specs=pl.BlockSpec((Mb, D), lambda b, l: (b, 0)),      # resident over l
        scratch_shapes=[pltpu.VMEM((Bb, L, L), jnp.float32),       # mask (built once)
                        pltpu.VMEM((Mb, n_heads * d_v), jnp.float32)],  # head ctx
        compiler_params=pltpu.CompilerParams(
            dimension_semantics=("parallel", "arbitrary"),
            vmem_limit_bytes=vmem_limit),
    )(x0, pad3, *weights)


# ----------------------------------------------------------------------------
# Final vocab projection (Linear d_model -> vocab, no bias), tiled over M and V.
# Weight is stored pre-transposed, bf16, padded to a lane-dense multiple of 512.
# ----------------------------------------------------------------------------
def proj_kernel(x_ref, w_ref, o_ref):
    o_ref[...] = jnp.dot(x_ref[...].astype(jnp.bfloat16), w_ref[...],
                         preferred_element_type=jnp.float32)


def tgt_projection(x2d, w_t, vocab):
    M, D = x2d.shape
    Vp = w_t.shape[1]
    tv = 512 if Vp % 512 == 0 else (256 if Vp % 256 == 0 else 128)
    tm = 256 if M % 256 == 0 else M

    need = (2 * tm * D * 4 + 2 * D * tv * 2 + 2 * tm * tv * 4)
    vmem_limit = int(min(max(int(need * 1.5), 32 * 1024 * 1024),
                         100 * 1024 * 1024))

    out = pl.pallas_call(
        proj_kernel,
        out_shape=jax.ShapeDtypeStruct((M, Vp), jnp.float32),
        grid=(M // tm, Vp // tv),
        in_specs=[pl.BlockSpec((tm, D), lambda i, j: (i, 0)),
                  pl.BlockSpec((D, tv), lambda i, j: (0, j))],
        out_specs=pl.BlockSpec((tm, tv), lambda i, j: (i, j)),
        compiler_params=pltpu.CompilerParams(
            dimension_semantics=("parallel", "parallel"),
            vmem_limit_bytes=vmem_limit),
    )(x2d, w_t)
    return out[:, :vocab]


# ----------------------------------------------------------------------------
# Parameter construction (deterministic, synthetic, stacked per layer).
# Matmul weights are bf16 (halved DMA/VMEM); biases / LN params stay f32.
# ----------------------------------------------------------------------------
def make_params(key, *, n_layers, d_k, d_v, d_model, d_ff, n_heads,
                max_seq_len, vocab):
    keys = jax.random.split(key, 7)      # exact budget: emb + 6 weight tensors
    scale = 0.02
    H = n_heads

    def rnd(k, shape):
        return (scale * jax.random.normal(k, shape, jnp.float32)
                ).astype(jnp.bfloat16)

    emb = jax.random.normal(keys[0], (vocab, d_model), jnp.float32)

    # sinusoidal positional table, row 0 is the PAD (all-zero) row
    pos = np.arange(max_seq_len * 10, dtype=np.float64)
    j = np.arange(d_model, dtype=np.float64)
    angles = pos[:, None] / np.power(10000.0, 2.0 * (j // 2) / d_model)
    pe = np.zeros_like(angles)
    pe[:, 0::2] = np.sin(angles[:, 0::2])
    pe[:, 1::2] = np.cos(angles[:, 1::2])
    pos_table = jnp.asarray(
        np.concatenate([np.zeros((1, d_model)), pe], axis=0), jnp.float32)

    layers = {
        # fused per-head weights: lane-dense N = H*d_k / H*d_v
        'wq': rnd(keys[1], (n_layers, d_model, H * d_k)),
        'wk': rnd(keys[2], (n_layers, d_model, H * d_k)),
        'wv': rnd(keys[3], (n_layers, d_model, H * d_v)),
        'wo': rnd(keys[4], (n_layers, H * d_v, d_model)),
        'bo': jnp.zeros((n_layers, 1, d_model), jnp.float32),
        'ln1_g': jnp.ones((n_layers, 1, d_model), jnp.float32),
        'ln1_b': jnp.zeros((n_layers, 1, d_model), jnp.float32),
        'w1': rnd(keys[5], (n_layers, d_model, d_ff)),
        'b1': jnp.zeros((n_layers, 1, d_ff), jnp.float32),
        'w2': rnd(keys[6], (n_layers, d_ff, d_model)),
        'b2': jnp.zeros((n_layers, 1, d_model), jnp.float32),
        'ln2_g': jnp.ones((n_layers, 1, d_model), jnp.float32),
        'ln2_b': jnp.zeros((n_layers, 1, d_model), jnp.float32),
    }

    # shared projection weight, pre-transposed (D, V), bf16, padded to mult of 512
    v_pad = ((vocab + 511) // 512) * 512
    proj_w = jnp.zeros((d_model, v_pad), jnp.bfloat16)
    proj_w = proj_w.at[:, :vocab].set(jnp.transpose(emb).astype(jnp.bfloat16))

    return {'emb': emb,
            'proj_w': proj_w,
            'pos_table': pos_table,
            'layers': layers}


# ----------------------------------------------------------------------------
# Full LMTransformer forward (share_proj_weight=True, weighted_model=False)
# ----------------------------------------------------------------------------
def lm_transformer_forward(params, dec_inputs, dec_inputs_len,
                           *, n_heads, d_k, d_v):
    B, L = dec_inputs.shape
    emb = params['emb']
    vocab, d_model = emb.shape

    # --- embedding + positional encoding (glue: cheap gathers) ---
    tok = jnp.take(emb, jnp.clip(dec_inputs, 0, vocab - 1), axis=0)         # (B,L,D)
    positions = jnp.arange(1, L + 1, dtype=jnp.int32)                       # (L,)
    input_pos = jnp.where(positions[None, :] <= dec_inputs_len[:, None],
                          positions[None, :], 0)                            # (B, L)
    pos = jnp.take(params['pos_table'], input_pos, axis=0)                  # (B,L,D)
    x = (tok + pos).reshape(B * L, d_model)          # dropout = no-op (eval)

    # key-pad indicator, (B, 1, L) — causal|pad mask is built inside the kernel
    pad3 = (dec_inputs == -1).astype(jnp.float32).reshape(B, 1, L)

    # --- fused decoder stack (single Pallas kernel; batch "parallel", layer
    #     "arbitrary"; batch_block=1 → one batch element per megacore shard) ---
    y = lm_decoder_stack(x, pad3, params['layers'],
                         n_heads=n_heads, d_k=d_k, d_v=d_v,
                         batch_block=1)                                     # (B*L, D)

    # --- shared-weight target projection (Pallas, M x V tiled, bf16 weight) ---
    logits = tgt_projection(y, params['proj_w'], vocab)                     # (B*L, V)
    return logits, []


# ----------------------------------------------------------------------------
if __name__ == "__main__":
    # hyper-parameters (small, consistent with the module's __init__)
    n_layers, d_k, d_v = 2, 8, 8
    d_model, d_ff, n_heads = 32, 64, 4
    max_tgt_seq_len, tgt_vocab_size = 8, 64
    B, L = 2, 8

    key = jax.random.PRNGKey(0)
    k_param, k_tok = jax.random.split(key)

    params = make_params(k_param, n_layers=n_layers, d_k=d_k, d_v=d_v,
                         d_model=d_model, d_ff=d_ff, n_heads=n_heads,
                         max_seq_len=max_tgt_seq_len, vocab=tgt_vocab_size)

    dec_inputs = jax.random.randint(k_tok, (B, L), 0, tgt_vocab_size,
                                    dtype=jnp.int32)
    dec_inputs_len = jnp.array([L, L], dtype=jnp.int32)

    logits, _ = lm_transformer_forward(params, dec_inputs, dec_inputs_len,
                                       n_heads=n_heads, d_k=d_k, d_v=d_v)
    logits = jax.block_until_ready(logits)

    assert logits.shape == (B * L, tgt_vocab_size), logits.shape
    assert bool(jnp.all(jnp.isfinite(logits)))
    print("KERNEL_OK")
</pallas_src>

<mosaic_0001>
module attributes {stable_mosaic.version = 11 : i64} {
  func.func @fused_decoder_kernel(%arg0: i32, %arg1: i32, %arg2: memref<8x32xf32, #tpu.memory_space<vmem>>, %arg3: memref<1x1x8xf32, #tpu.memory_space<vmem>>, %arg4: memref<1x32x32xbf16, #tpu.memory_space<vmem>>, %arg5: memref<1x32x32xbf16, #tpu.memory_space<vmem>>, %arg6: memref<1x32x32xbf16, #tpu.memory_space<vmem>>, %arg7: memref<1x32x32xbf16, #tpu.memory_space<vmem>>, %arg8: memref<1x1x32xf32, #tpu.memory_space<vmem>>, %arg9: memref<1x1x32xf32, #tpu.memory_space<vmem>>, %arg10: memref<1x1x32xf32, #tpu.memory_space<vmem>>, %arg11: memref<1x32x64xbf16, #tpu.memory_space<vmem>>, %arg12: memref<1x1x64xf32, #tpu.memory_space<vmem>>, %arg13: memref<1x64x32xbf16, #tpu.memory_space<vmem>>, %arg14: memref<1x1x32xf32, #tpu.memory_space<vmem>>, %arg15: memref<1x1x32xf32, #tpu.memory_space<vmem>>, %arg16: memref<1x1x32xf32, #tpu.memory_space<vmem>>, %arg17: memref<8x32xf32, #tpu.memory_space<vmem>>, %arg18: memref<1x8x8xf32, #tpu.memory_space<vmem>>, %arg19: memref<8x32xf32, #tpu.memory_space<vmem>>) attributes {dimension_semantics = [#tpu.dimension_semantics<parallel>, #tpu.dimension_semantics<arbitrary>], iteration_bounds = array<i64: 2, 2>, scalar_prefetch = 0 : i64, scratch_operands = 2 : i64, tpu.core_type = #tpu.core_type<tc>, window_params = [{transform_indices = @transform_0, window_bounds = array<i64: 8, 32>}, {transform_indices = @transform_1, window_bounds = array<i64: 1, 1, 8>}, {transform_indices = @transform_2, window_bounds = array<i64: 1, 32, 32>}, {transform_indices = @transform_3, window_bounds = array<i64: 1, 32, 32>}, {transform_indices = @transform_4, window_bounds = array<i64: 1, 32, 32>}, {transform_indices = @transform_5, window_bounds = array<i64: 1, 32, 32>}, {transform_indices = @transform_6, window_bounds = array<i64: 1, 1, 32>}, {transform_indices = @transform_7, window_bounds = array<i64: 1, 1, 32>}, {transform_indices = @transform_8, window_bounds = array<i64: 1, 1, 32>}, {transform_indices = @transform_9, window_bounds = array<i64: 1, 32, 64>}, {transform_indices = @transform_10, window_bounds = array<i64: 1, 1, 64>}, {transform_indices = @transform_11, window_bounds = array<i64: 1, 64, 32>}, {transform_indices = @transform_12, window_bounds = array<i64: 1, 1, 32>}, {transform_indices = @transform_13, window_bounds = array<i64: 1, 1, 32>}, {transform_indices = @transform_14, window_bounds = array<i64: 1, 1, 32>}, {transform_indices = @transform_15, window_bounds = array<i64: 8, 32>}]} {
    %c0_i32 = arith.constant 0 : i32
    %0 = arith.cmpi eq, %arg1, %c0_i32 : i32
    %1 = arith.extui %0 : i1 to i32
    %c0_i32_0 = arith.constant 0 : i32
    %2 = arith.cmpi ne, %1, %c0_i32_0 : i32
    scf.if %2 {
      %c0_94 = arith.constant 0 : index
      %c0_95 = arith.constant 0 : index
      %211 = vector.load %arg2[%c0_94, %c0_95] : memref<8x32xf32, #tpu.memory_space<vmem>>, vector<8x32xf32>
      %c0_96 = arith.constant 0 : index
      %c0_97 = arith.constant 0 : index
      %212 = vector.load %arg17[%c0_96, %c0_97] : memref<8x32xf32, #tpu.memory_space<vmem>>, vector<8x32xf32>
      tpu.vector_store %arg17[%c0_96, %c0_97], %211 {strides = array<i32>} : memref<8x32xf32, #tpu.memory_space<vmem>>, vector<8x32xf32>,
      %213 = tpu.iota {dimensions = array<i32: 0>} : vector<8x8xi32>
      %214 = tpu.iota {dimensions = array<i32: 1>} : vector<8x8xi32>
      %215 = arith.cmpi sgt, %214, %213 : vector<8x8xi32>
      %216 = arith.extui %215 : vector<8x8xi1> to vector<8x8xi32>
      %217 = arith.sitofp %216 : vector<8x8xi32> to vector<8x8xf32>
      %c0_98 = arith.constant 0 : index
      %c0_99 = arith.constant 0 : index
      %c0_100 = arith.constant 0 : index
      %218 = vector.load %arg3[%c0_98, %c0_99, %c0_100] : memref<1x1x8xf32, #tpu.memory_space<vmem>>, vector<1x1x8xf32>
      %219 = vector.shape_cast %218 : vector<1x1x8xf32> to vector<1x8xf32>
      %cst_101 = arith.constant 5.000000e-01 : f32
      %220 = vector.broadcast %cst_101 : f32 to vector<1x8xf32>
      %221 = arith.cmpf ogt, %219, %220 : vector<1x8xf32>
      %222 = arith.extui %221 : vector<1x8xi1> to vector<1x8xi32>
      %223 = arith.sitofp %222 : vector<1x8xi32> to vector<1x8xf32>
      %224 = vector.shape_cast %217 : vector<8x8xf32> to vector<1x8x8xf32>
      %225 = vector.shape_cast %223 : vector<1x8xf32> to vector<1x1x8xf32>
      %226 = vector.broadcast %225 : vector<1x1x8xf32> to vector<1x8x8xf32>
      %227 = arith.maximumf %224, %226 : vector<1x8x8xf32>
      %c0_102 = arith.constant 0 : index
      %c0_103 = arith.constant 0 : index
      %c0_104 = arith.constant 0 : index
      %228 = vector.load %arg18[%c0_102, %c0_103, %c0_104] : memref<1x8x8xf32, #tpu.memory_space<vmem>>, vector<1x8x8xf32>
      tpu.vector_store %arg18[%c0_102, %c0_103, %c0_104], %227 {strides = array<i32>} : memref<1x8x8xf32, #tpu.memory_space<vmem>>, vector<1x8x8xf32>,
    } else {
    }
    %c0 = arith.constant 0 : index
    %c0_1 = arith.constant 0 : index
    %3 = vector.load %arg17[%c0, %c0_1] : memref<8x32xf32, #tpu.memory_space<vmem>>, vector<8x32xf32>
    %4 = arith.truncf %3 : vector<8x32xf32> to vector<8x32xbf16>
    %c0_2 = arith.constant 0 : index
    %c0_3 = arith.constant 0 : index
    %c0_4 = arith.constant 0 : index
    %5 = vector.load %arg18[%c0_2, %c0_3, %c0_4] : memref<1x8x8xf32, #tpu.memory_space<vmem>>, vector<1x8x8xf32>
    %cst = arith.constant 5.000000e-01 : f32
    %6 = vector.broadcast %cst : f32 to vector<1x8x8xf32>
    %7 = arith.cmpf ogt, %5, %6 : vector<1x8x8xf32>
    %c0_5 = arith.constant 0 : index
    %c0_6 = arith.constant 0 : index
    %c0_7 = arith.constant 0 : index
    %8 = vector.load %arg8[%c0_5, %c0_6, %c0_7] : memref<1x1x32xf32, #tpu.memory_space<vmem>>, vector<1x1x32xf32>
    %9 = vector.shape_cast %8 : vector<1x1x32xf32> to vector<1x32xf32>
    %c0_8 = arith.constant 0 : index
    %c0_9 = arith.constant 0 : index
    %c0_10 = arith.constant 0 : index
    %10 = vector.load %arg9[%c0_8, %c0_9, %c0_10] : memref<1x1x32xf32, #tpu.memory_space<vmem>>, vector<1x1x32xf32>
    %11 = vector.shape_cast %10 : vector<1x1x32xf32> to vector<1x32xf32>
    %c0_11 = arith.constant 0 : index
    %c0_12 = arith.constant 0 : index
    %c0_13 = arith.constant 0 : index
    %12 = vector.load %arg10[%c0_11, %c0_12, %c0_13] : memref<1x1x32xf32, #tpu.memory_space<vmem>>, vector<1x1x32xf32>
    %13 = vector.shape_cast %12 : vector<1x1x32xf32> to vector<1x32xf32>
    %c0_14 = arith.constant 0 : index
    %c0_15 = arith.constant 0 : index
    %c0_16 = arith.constant 0 : index
    %14 = vector.load %arg11[%c0_14, %c0_15, %c0_16] : memref<1x32x64xbf16, #tpu.memory_space<vmem>>, vector<1x32x64xbf16>
    %15 = vector.shape_cast %14 : vector<1x32x64xbf16> to vector<32x64xbf16>
    %c0_17 = arith.constant 0 : index
    %c0_18 = arith.constant 0 : index
    %c0_19 = arith.constant 0 : index
    %16 = vector.load %arg12[%c0_17, %c0_18, %c0_19] : memref<1x1x64xf32, #tpu.memory_space<vmem>>, vector<1x1x64xf32>
    %17 = vector.shape_cast %16 : vector<1x1x64xf32> to vector<1x64xf32>
    %c0_20 = arith.constant 0 : index
    %c0_21 = arith.constant 0 : index
    %c0_22 = arith.constant 0 : index
    %18 = vector.load %arg13[%c0_20, %c0_21, %c0_22] : memref<1x64x32xbf16, #tpu.memory_space<vmem>>, vector<1x64x32xbf16>
    %19 = vector.shape_cast %18 : vector<1x64x32xbf16> to vector<64x32xbf16>
    %c0_23 = arith.constant 0 : index
    %c0_24 = arith.constant 0 : index
    %c0_25 = arith.constant 0 : index
    %20 = vector.load %arg14[%c0_23, %c0_24, %c0_25] : memref<1x1x32xf32, #tpu.memory_space<vmem>>, vector<1x1x32xf32>
    %21 = vector.shape_cast %20 : vector<1x1x32xf32> to vector<1x32xf32>
    %c0_26 = arith.constant 0 : index
    %c0_27 = arith.constant 0 : index
    %c0_28 = arith.constant 0 : index
    %22 = vector.load %arg15[%c0_26, %c0_27, %c0_28] : memref<1x1x32xf32, #tpu.memory_space<vmem>>, vector<1x1x32xf32>
    %23 = vector.shape_cast %22 : vector<1x1x32xf32> to vector<1x32xf32>
    %c0_29 = arith.constant 0 : index
    %c0_30 = arith.constant 0 : index
    %c0_31 = arith.constant 0 : index
    %24 = vector.load %arg16[%c0_29, %c0_30, %c0_31] : memref<1x1x32xf32, #tpu.memory_space<vmem>>, vector<1x1x32xf32>
    %25 = vector.shape_cast %24 : vector<1x1x32xf32> to vector<1x32xf32>
    %c0_32 = arith.constant 0 : index
    %c0_33 = arith.constant 0 : index
    %c0_34 = arith.constant 0 : index
    %26 = vector.load %arg4[%c0_32, %c0_33, %c0_34] : memref<1x32x32xbf16, #tpu.memory_space<vmem>>, vector<1x32x32xbf16>
    %27 = vector.shape_cast %26 : vector<1x32x32xbf16> to vector<32x32xbf16>
    %cst_35 = arith.constant dense<0.000000e+00> : vector<8x32xf32>
    %28 = tpu.matmul %4, %27, %cst_35 {dimension_numbers = #tpu.dot_dimension_numbers<[1], [0], [0], [1], [0, 0, 1, 1], [], []>} : vector<8x32xbf16>, vector<32x32xbf16>, vector<8x32xf32> -> vector<8x32xf32>
    %c0_36 = arith.constant 0 : index
    %c0_37 = arith.constant 0 : index
    %c0_38 = arith.constant 0 : index
    %29 = vector.load %arg5[%c0_36, %c0_37, %c0_38] : memref<1x32x32xbf16, #tpu.memory_space<vmem>>, vector<1x32x32xbf16>
    %30 = vector.shape_cast %29 : vector<1x32x32xbf16> to vector<32x32xbf16>
    %cst_39 = arith.constant dense<0.000000e+00> : vector<8x32xf32>
    %31 = tpu.matmul %4, %30, %cst_39 {dimension_numbers = #tpu.dot_dimension_numbers<[1], [0], [0], [1], [0, 0, 1, 1], [], []>} : vector<8x32xbf16>, vector<32x32xbf16>, vector<8x32xf32> -> vector<8x32xf32>
    %c0_40 = arith.constant 0 : index
    %c0_41 = arith.constant 0 : index
    %c0_42 = arith.constant 0 : index
    %32 = vector.load %arg6[%c0_40, %c0_41, %c0_42] : memref<1x32x32xbf16, #tpu.memory_space<vmem>>, vector<1x32x32xbf16>
    %33 = vector.shape_cast %32 : vector<1x32x32xbf16> to vector<32x32xbf16>
    %cst_43 = arith.constant dense<0.000000e+00> : vector<8x32xf32>
    %34 = tpu.matmul %4, %33, %cst_43 {dimension_numbers = #tpu.dot_dimension_numbers<[1], [0], [0], [1], [0, 0, 1, 1], [], []>} : vector<8x32xbf16>, vector<32x32xbf16>, vector<8x32xf32> -> vector<8x32xf32>
    %35 = vector.extract_strided_slice %28 {offsets = [0, 0], sizes = [8, 8], strides = [1, 1]} : vector<8x32xf32> to vector<8x8xf32>
    %36 = vector.shape_cast %35 : vector<8x8xf32> to vector<1x8x8xf32>
    %37 = vector.extract_strided_slice %31 {offsets = [0, 0], sizes = [8, 8], strides = [1, 1]} : vector<8x32xf32> to vector<8x8xf32>
    %38 = vector.shape_cast %37 : vector<8x8xf32> to vector<1x8x8xf32>
    %39 = vector.extract_strided_slice %34 {offsets = [0, 0], sizes = [8, 8], strides = [1, 1]} : vector<8x32xf32> to vector<8x8xf32>
    %40 = vector.shape_cast %39 : vector<8x8xf32> to vector<1x8x8xf32>
    %41 = arith.truncf %36 : vector<1x8x8xf32> to vector<1x8x8xbf16>
    %42 = arith.truncf %38 : vector<1x8x8xf32> to vector<1x8x8xbf16>
    "tpu.trace_start"() <{level = 10 : i32, message = "bqd,bkd->bqk"}> : () -> ()
    %cst_44 = arith.constant dense<0.000000e+00> : vector<1x8x8xf32>
    %43 = tpu.matmul %41, %42, %cst_44 {dimension_numbers = #tpu.dot_dimension_numbers<[2], [2], [1], [1], [0, 0, 0, 1, 1, 1], [0], [0]>} : vector<1x8x8xbf16>, vector<1x8x8xbf16>, vector<1x8x8xf32> -> vector<1x8x8xf32>
    "tpu.trace_stop"() : () -> ()
    %cst_45 = arith.constant 0.353553385 : f32
    %44 = vector.broadcast %cst_45 : f32 to vector<1x8x8xf32>
    %45 = arith.mulf %43, %44 : vector<1x8x8xf32>
    %cst_46 = arith.constant -1.000000e+09 : f32
    %46 = vector.broadcast %cst_46 : f32 to vector<1x8x8xf32>
    %47 = arith.select %7, %46, %45 : vector<1x8x8xi1>, vector<1x8x8xf32>
    %cst_47 = arith.constant dense<0xFF800000> : vector<1x8xf32>
    %48 = vector.multi_reduction <maximumf>, %47, %cst_47 [2] : vector<1x8x8xf32> to vector<1x8xf32>
    %49 = vector.shape_cast %48 : vector<1x8xf32> to vector<1x8x1xf32>
    %50 = vector.broadcast %49 : vector<1x8x1xf32> to vector<1x8x8xf32>
    %51 = arith.subf %47, %50 : vector<1x8x8xf32>
    %52 = math.exp %51 : vector<1x8x8xf32>
    %cst_48 = arith.constant dense<0.000000e+00> : vector<1x8xf32>
    %53 = vector.multi_reduction <add>, %52, %cst_48 [2] : vector<1x8x8xf32> to vector<1x8xf32>
    %54 = vector.shape_cast %53 : vector<1x8xf32> to vector<1x8x1xf32>
    %55 = tpu.reciprocal %54 {approx = true} : vector<1x8x1xf32> -> vector<1x8x1xf32>
    %56 = vector.broadcast %55 : vector<1x8x1xf32> to vector<1x8x8xf32>
    %57 = arith.mulf %52, %56 : vector<1x8x8xf32>
    %58 = arith.truncf %57 : vector<1x8x8xf32> to vector<1x8x8xbf16>
    %59 = arith.truncf %40 : vector<1x8x8xf32> to vector<1x8x8xbf16>
    "tpu.trace_start"() <{level = 10 : i32, message = "bqk,bkd->bqd"}> : () -> ()
    %cst_49 = arith.constant dense<0.000000e+00> : vector<1x8x8xf32>
    %60 = tpu.matmul %58, %59, %cst_49 {dimension_numbers = #tpu.dot_dimension_numbers<[2], [1], [1], [2], [0, 0, 0, 1, 1, 2], [0], [0]>} : vector<1x8x8xbf16>, vector<1x8x8xbf16>, vector<1x8x8xf32> -> vector<1x8x8xf32>
    "tpu.trace_stop"() : () -> ()
    %61 = vector.shape_cast %60 : vector<1x8x8xf32> to vector<8x8xf32>
    %c0_50 = arith.constant 0 : index
    %c0_51 = arith.constant 0 : index
    %62 = vector.load %arg19[%c0_50, %c0_51] : memref<8x32xf32, #tpu.memory_space<vmem>>, vector<8x8xf32>
    tpu.vector_store %arg19[%c0_50, %c0_51], %61 {strides = array<i32>} : memref<8x32xf32, #tpu.memory_space<vmem>>, vector<8x8xf32>,
    %63 = vector.extract_strided_slice %28 {offsets = [0, 8], sizes = [8, 8], strides = [1, 1]} : vector<8x32xf32> to vector<8x8xf32>
    %64 = vector.shape_cast %63 : vector<8x8xf32> to vector<1x8x8xf32>
    %65 = vector.extract_strided_slice %31 {offsets = [0, 8], sizes = [8, 8], strides = [1, 1]} : vector<8x32xf32> to vector<8x8xf32>
    %66 = vector.shape_cast %65 : vector<8x8xf32> to vector<1x8x8xf32>
    %67 = vector.extract_strided_slice %34 {offsets = [0, 8], sizes = [8, 8], strides = [1, 1]} : vector<8x32xf32> to vector<8x8xf32>
    %68 = vector.shape_cast %67 : vector<8x8xf32> to vector<1x8x8xf32>
    %69 = arith.truncf %64 : vector<1x8x8xf32> to vector<1x8x8xbf16>
    %70 = arith.truncf %66 : vector<1x8x8xf32> to vector<1x8x8xbf16>
    "tpu.trace_start"() <{level = 10 : i32, message = "bqd,bkd->bqk"}> : () -> ()
    %cst_52 = arith.constant dense<0.000000e+00> : vector<1x8x8xf32>
    %71 = tpu.matmul %69, %70, %cst_52 {dimension_numbers = #tpu.dot_dimension_numbers<[2], [2], [1], [1], [0, 0, 0, 1, 1, 1], [0], [0]>} : vector<1x8x8xbf16>, vector<1x8x8xbf16>, vector<1x8x8xf32> -> vector<1x8x8xf32>
    "tpu.trace_stop"() : () -> ()
    %cst_53 = arith.constant 0.353553385 : f32
    %72 = vector.broadcast %cst_53 : f32 to vector<1x8x8xf32>
    %73 = arith.mulf %71, %72 : vector<1x8x8xf32>
    %cst_54 = arith.constant -1.000000e+09 : f32
    %74 = vector.broadcast %cst_54 : f32 to vector<1x8x8xf32>
    %75 = arith.select %7, %74, %73 : vector<1x8x8xi1>, vector<1x8x8xf32>
    %cst_55 = arith.constant dense<0xFF800000> : vector<1x8xf32>
    %76 = vector.multi_reduction <maximumf>, %75, %cst_55 [2] : vector<1x8x8xf32> to vector<1x8xf32>
    %77 = vector.shape_cast %76 : vector<1x8xf32> to vector<1x8x1xf32>
    %78 = vector.broadcast %77 : vector<1x8x1xf32> to vector<1x8x8xf32>
    %79 = arith.subf %75, %78 : vector<1x8x8xf32>
    %80 = math.exp %79 : vector<1x8x8xf32>
    %cst_56 = arith.constant dense<0.000000e+00> : vector<1x8xf32>
    %81 = vector.multi_reduction <add>, %80, %cst_56 [2] : vector<1x8x8xf32> to vector<1x8xf32>
    %82 = vector.shape_cast %81 : vector<1x8xf32> to vector<1x8x1xf32>
    %83 = tpu.reciprocal %82 {approx = true} : vector<1x8x1xf32> -> vector<1x8x1xf32>
    %84 = vector.broadcast %83 : vector<1x8x1xf32> to vector<1x8x8xf32>
    %85 = arith.mulf %80, %84 : vector<1x8x8xf32>
    %86 = arith.truncf %85 : vector<1x8x8xf32> to vector<1x8x8xbf16>
    %87 = arith.truncf %68 : vector<1x8x8xf32> to vector<1x8x8xbf16>
    "tpu.trace_start"() <{level = 10 : i32, message = "bqk,bkd->bqd"}> : () -> ()
    %cst_57 = arith.constant dense<0.000000e+00> : vector<1x8x8xf32>
    %88 = tpu.matmul %86, %87, %cst_57 {dimension_numbers = #tpu.dot_dimension_numbers<[2], [1], [1], [2], [0, 0, 0, 1, 1, 2], [0], [0]>} : vector<1x8x8xbf16>, vector<1x8x8xbf16>, vector<1x8x8xf32> -> vector<1x8x8xf32>
    "tpu.trace_stop"() : () -> ()
    %89 = vector.shape_cast %88 : vector<1x8x8xf32> to vector<8x8xf32>
    %c0_58 = arith.constant 0 : index
    %c8 = arith.constant 8 : index
    %90 = vector.load %arg19[%c0_58, %c8] : memref<8x32xf32, #tpu.memory_space<vmem>>, vector<8x8xf32>
    tpu.vector_store %arg19[%c0_58, %c8], %89 {strides = array<i32>} : memref<8x32xf32, #tpu.memory_space<vmem>>, vector<8x8xf32>,
    %91 = vector.extract_strided_slice %28 {offsets = [0, 16], sizes = [8, 8], strides = [1, 1]} : vector<8x32xf32> to vector<8x8xf32>
    %92 = vector.shape_cast %91 : vector<8x8xf32> to vector<1x8x8xf32>
    %93 = vector.extract_strided_slice %31 {offsets = [0, 16], sizes = [8, 8], strides = [1, 1]} : vector<8x32xf32> to vector<8x8xf32>
    %94 = vector.shape_cast %93 : vector<8x8xf32> to vector<1x8x8xf32>
    %95 = vector.extract_strided_slice %34 {offsets = [0, 16], sizes = [8, 8], strides = [1, 1]} : vector<8x32xf32> to vector<8x8xf32>
    %96 = vector.shape_cast %95 : vector<8x8xf32> to vector<1x8x8xf32>
    %97 = arith.truncf %92 : vector<1x8x8xf32> to vector<1x8x8xbf16>
    %98 = arith.truncf %94 : vector<1x8x8xf32> to vector<1x8x8xbf16>
    "tpu.trace_start"() <{level = 10 : i32, message = "bqd,bkd->bqk"}> : () -> ()
    %cst_59 = arith.constant dense<0.000000e+00> : vector<1x8x8xf32>
    %99 = tpu.matmul %97, %98, %cst_59 {dimension_numbers = #tpu.dot_dimension_numbers<[2], [2], [1], [1], [0, 0, 0, 1, 1, 1], [0], [0]>} : vector<1x8x8xbf16>, vector<1x8x8xbf16>, vector<1x8x8xf32> -> vector<1x8x8xf32>
    "tpu.trace_stop"() : () -> ()
    %cst_60 = arith.constant 0.353553385 : f32
    %100 = vector.broadcast %cst_60 : f32 to vector<1x8x8xf32>
    %101 = arith.mulf %99, %100 : vector<1x8x8xf32>
    %cst_61 = arith.constant -1.000000e+09 : f32
    %102 = vector.broadcast %cst_61 : f32 to vector<1x8x8xf32>
    %103 = arith.select %7, %102, %101 : vector<1x8x8xi1>, vector<1x8x8xf32>
    %cst_62 = arith.constant dense<0xFF800000> : vector<1x8xf32>
    %104 = vector.multi_reduction <maximumf>, %103, %cst_62 [2] : vector<1x8x8xf32> to vector<1x8xf32>
    %105 = vector.shape_cast %104 : vector<1x8xf32> to vector<1x8x1xf32>
    %106 = vector.broadcast %105 : vector<1x8x1xf32> to vector<1x8x8xf32>
    %107 = arith.subf %103, %106 : vector<1x8x8xf32>
    %108 = math.exp %107 : vector<1x8x8xf32>
    %cst_63 = arith.constant dense<0.000000e+00> : vector<1x8xf32>
    %109 = vector.multi_reduction <add>, %108, %cst_63 [2] : vector<1x8x8xf32> to vector<1x8xf32>
    %110 = vector.shape_cast %109 : vector<1x8xf32> to vector<1x8x1xf32>
    %111 = tpu.reciprocal %110 {approx = true} : vector<1x8x1xf32> -> vector<1x8x1xf32>
    %112 = vector.broadcast %111 : vector<1x8x1xf32> to vector<1x8x8xf32>
    %113 = arith.mulf %108, %112 : vector<1x8x8xf32>
    %114 = arith.truncf %113 : vector<1x8x8xf32> to vector<1x8x8xbf16>
    %115 = arith.truncf %96 : vector<1x8x8xf32> to vector<1x8x8xbf16>
    "tpu.trace_start"() <{level = 10 : i32, message = "bqk,bkd->bqd"}> : () -> ()
    %cst_64 = arith.constant dense<0.000000e+00> : vector<1x8x8xf32>
    %116 = tpu.matmul %114, %115, %cst_64 {dimension_numbers = #tpu.dot_dimension_numbers<[2], [1], [1], [2], [0, 0, 0, 1, 1, 2], [0], [0]>} : vector<1x8x8xbf16>, vector<1x8x8xbf16>, vector<1x8x8xf32> -> vector<1x8x8xf32>
    "tpu.trace_stop"() : () -> ()
    %117 = vector.shape_cast %116 : vector<1x8x8xf32> to vector<8x8xf32>
    %c0_65 = arith.constant 0 : index
    %c16 = arith.constant 16 : index
    %118 = vector.load %arg19[%c0_65, %c16] : memref<8x32xf32, #tpu.memory_space<vmem>>, vector<8x8xf32>
    tpu.vector_store %arg19[%c0_65, %c16], %117 {strides = array<i32>} : memref<8x32xf32, #tpu.memory_space<vmem>>, vector<8x8xf32>,
    %119 = vector.extract_strided_slice %28 {offsets = [0, 24], sizes = [8, 8], strides = [1, 1]} : vector<8x32xf32> to vector<8x8xf32>
    %120 = vector.shape_cast %119 : vector<8x8xf32> to vector<1x8x8xf32>
    %121 = vector.extract_strided_slice %31 {offsets = [0, 24], sizes = [8, 8], strides = [1, 1]} : vector<8x32xf32> to vector<8x8xf32>
    %122 = vector.shape_cast %121 : vector<8x8xf32> to vector<1x8x8xf32>
    %123 = vector.extract_strided_slice %34 {offsets = [0, 24], sizes = [8, 8], strides = [1, 1]} : vector<8x32xf32> to vector<8x8xf32>
    %124 = vector.shape_cast %123 : vector<8x8xf32> to vector<1x8x8xf32>
    %125 = arith.truncf %120 : vector<1x8x8xf32> to vector<1x8x8xbf16>
    %126 = arith.truncf %122 : vector<1x8x8xf32> to vector<1x8x8xbf16>
    "tpu.trace_start"() <{level = 10 : i32, message = "bqd,bkd->bqk"}> : () -> ()
    %cst_66 = arith.constant dense<0.000000e+00> : vector<1x8x8xf32>
    %127 = tpu.matmul %125, %126, %cst_66 {dimension_numbers = #tpu.dot_dimension_numbers<[2], [2], [1], [1], [0, 0, 0, 1, 1, 1], [0], [0]>} : vector<1x8x8xbf16>, vector<1x8x8xbf16>, vector<1x8x8xf32> -> vector<1x8x8xf32>
    "tpu.trace_stop"() : () -> ()
    %cst_67 = arith.constant 0.353553385 : f32
    %128 = vector.broadcast %cst_67 : f32 to vector<1x8x8xf32>
    %129 = arith.mulf %127, %128 : vector<1x8x8xf32>
    %cst_68 = arith.constant -1.000000e+09 : f32
    %130 = vector.broadcast %cst_68 : f32 to vector<1x8x8xf32>
    %131 = arith.select %7, %130, %129 : vector<1x8x8xi1>, vector<1x8x8xf32>
    %cst_69 = arith.constant dense<0xFF800000> : vector<1x8xf32>
    %132 = vector.multi_reduction <maximumf>, %131, %cst_69 [2] : vector<1x8x8xf32> to vector<1x8xf32>
    %133 = vector.shape_cast %132 : vector<1x8xf32> to vector<1x8x1xf32>
    %134 = vector.broadcast %133 : vector<1x8x1xf32> to vector<1x8x8xf32>
    %135 = arith.subf %131, %134 : vector<1x8x8xf32>
    %136 = math.exp %135 : vector<1x8x8xf32>
    %cst_70 = arith.constant dense<0.000000e+00> : vector<1x8xf32>
    %137 = vector.multi_reduction <add>, %136, %cst_70 [2] : vector<1x8x8xf32> to vector<1x8xf32>
    %138 = vector.shape_cast %137 : vector<1x8xf32> to vector<1x8x1xf32>
    %139 = tpu.reciprocal %138 {approx = true} : vector<1x8x1xf32> -> vector<1x8x1xf32>
    %140 = vector.broadcast %139 : vector<1x8x1xf32> to vector<1x8x8xf32>
    %141 = arith.mulf %136, %140 : vector<1x8x8xf32>
    %142 = arith.truncf %141 : vector<1x8x8xf32> to vector<1x8x8xbf16>
    %143 = arith.truncf %124 : vector<1x8x8xf32> to vector<1x8x8xbf16>
    "tpu.trace_start"() <{level = 10 : i32, message = "bqk,bkd->bqd"}> : () -> ()
    %cst_71 = arith.constant dense<0.000000e+00> : vector<1x8x8xf32>
    %144 = tpu.matmul %142, %143, %cst_71 {dimension_numbers = #tpu.dot_dimension_numbers<[2], [1], [1], [2], [0, 0, 0, 1, 1, 2], [0], [0]>} : vector<1x8x8xbf16>, vector<1x8x8xbf16>, vector<1x8x8xf32> -> vector<1x8x8xf32>
    "tpu.trace_stop"() : () -> ()
    %145 = vector.shape_cast %144 : vector<1x8x8xf32> to vector<8x8xf32>
    %c0_72 = arith.constant 0 : index
    %c24 = arith.constant 24 : index
    %146 = vector.load %arg19[%c0_72, %c24] : memref<8x32xf32, #tpu.memory_space<vmem>>, vector<8x8xf32>
    tpu.vector_store %arg19[%c0_72, %c24], %145 {strides = array<i32>} : memref<8x32xf32, #tpu.memory_space<vmem>>, vector<8x8xf32>,
    %c0_73 = arith.constant 0 : index
    %c0_74 = arith.constant 0 : index
    %147 = vector.load %arg19[%c0_73, %c0_74] : memref<8x32xf32, #tpu.memory_space<vmem>>, vector<8x32xf32>
    %148 = arith.truncf %147 : vector<8x32xf32> to vector<8x32xbf16>
    %c0_75 = arith.constant 0 : index
    %c0_76 = arith.constant 0 : index
    %c0_77 = arith.constant 0 : index
    %149 = vector.load %arg7[%c0_75, %c0_76, %c0_77] : memref<1x32x32xbf16, #tpu.memory_space<vmem>>, vector<1x32x32xbf16>
    %150 = vector.shape_cast %149 : vector<1x32x32xbf16> to vector<32x32xbf16>
    %cst_78 = arith.constant dense<0.000000e+00> : vector<8x32xf32>
    %151 = tpu.matmul %148, %150, %cst_78 {dimension_numbers = #tpu.dot_dimension_numbers<[1], [0], [0], [1], [0, 0, 1, 1], [], []>} : vector<8x32xbf16>, vector<32x32xbf16>, vector<8x32xf32> -> vector<8x32xf32>
    %152 = vector.broadcast %9 : vector<1x32xf32> to vector<8x32xf32>
    %153 = arith.addf %151, %152 : vector<8x32xf32>
    %154 = arith.addf %3, %153 : vector<8x32xf32>
    %cst_79 = arith.constant dense<0.000000e+00> : vector<8xf32>
    %155 = vector.multi_reduction <add>, %154, %cst_79 [1] : vector<8x32xf32> to vector<8xf32>
    %156 = vector.shape_cast %155 : vector<8xf32> to vector<8x1xf32>
    %cst_80 = arith.constant 3.200000e+01 : f32
    %157 = vector.broadcast %cst_80 : f32 to vector<8x1xf32>
    %158 = arith.divf %156, %157 : vector<8x1xf32>
    %159 = vector.broadcast %158 : vector<8x1xf32> to vector<8x32xf32>
    %160 = arith.subf %154, %159 : vector<8x32xf32>
    %161 = arith.mulf %160, %160 : vector<8x32xf32>
    %cst_81 = arith.constant dense<0.000000e+00> : vector<8xf32>
    %162 = vector.multi_reduction <add>, %161, %cst_81 [1] : vector<8x32xf32> to vector<8xf32>
    %163 = vector.shape_cast %162 : vector<8xf32> to vector<8x1xf32>
    %cst_82 = arith.constant 3.100000e+01 : f32
    %164 = vector.broadcast %cst_82 : f32 to vector<8x1xf32>
    %165 = arith.divf %163, %164 : vector<8x1xf32>
    %166 = math.sqrt %165 : vector<8x1xf32>
    %167 = vector.broadcast %158 : vector<8x1xf32> to vector<8x32xf32>
    %168 = arith.subf %154, %167 : vector<8x32xf32>
    %cst_83 = arith.constant 9.99999997E-7 : f32
    %169 = vector.broadcast %cst_83 : f32 to vector<8x1xf32>
    %170 = arith.addf %166, %169 : vector<8x1xf32>
    %171 = vector.broadcast %170 : vector<8x1xf32> to vector<8x32xf32>
    %172 = arith.divf %168, %171 : vector<8x32xf32>
    %173 = vector.broadcast %11 : vector<1x32xf32> to vector<8x32xf32>
    %174 = arith.mulf %173, %172 : vector<8x32xf32>
    %175 = vector.broadcast %13 : vector<1x32xf32> to vector<8x32xf32>
    %176 = arith.addf %174, %175 : vector<8x32xf32>
    %177 = arith.truncf %176 : vector<8x32xf32> to vector<8x32xbf16>
    %cst_84 = arith.constant dense<0.000000e+00> : vector<8x64xf32>
    %178 = tpu.matmul %177, %15, %cst_84 {dimension_numbers = #tpu.dot_dimension_numbers<[1], [0], [0], [1], [0, 0, 1, 1], [], []>} : vector<8x32xbf16>, vector<32x64xbf16>, vector<8x64xf32> -> vector<8x64xf32>
    %179 = vector.broadcast %17 : vector<1x64xf32> to vector<8x64xf32>
    %180 = arith.addf %178, %179 : vector<8x64xf32>
    %cst_85 = arith.constant 0.000000e+00 : f32
    %181 = vector.broadcast %cst_85 : f32 to vector<8x64xf32>
    %182 = arith.maximumf %180, %181 : vector<8x64xf32>
    %183 = arith.truncf %182 : vector<8x64xf32> to vector<8x64xbf16>
    %cst_86 = arith.constant dense<0.000000e+00> : vector<8x32xf32>
    %184 = tpu.matmul %183, %19, %cst_86 {dimension_numbers = #tpu.dot_dimension_numbers<[1], [0], [0], [1], [0, 0, 1, 1], [], []>} : vector<8x64xbf16>, vector<64x32xbf16>, vector<8x32xf32> -> vector<8x32xf32>
    %185 = vector.broadcast %21 : vector<1x32xf32> to vector<8x32xf32>
    %186 = arith.addf %184, %185 : vector<8x32xf32>
    %187 = arith.addf %176, %186 : vector<8x32xf32>
    %cst_87 = arith.constant dense<0.000000e+00> : vector<8xf32>
    %188 = vector.multi_reduction <add>, %187, %cst_87 [1] : vector<8x32xf32> to vector<8xf32>
    %189 = vector.shape_cast %188 : vector<8xf32> to vector<8x1xf32>
    %cst_88 = arith.constant 3.200000e+01 : f32
    %190 = vector.broadcast %cst_88 : f32 to vector<8x1xf32>
    %191 = arith.divf %189, %190 : vector<8x1xf32>
    %192 = vector.broadcast %191 : vector<8x1xf32> to vector<8x32xf32>
    %193 = arith.subf %187, %192 : vector<8x32xf32>
    %194 = arith.mulf %193, %193 : vector<8x32xf32>
    %cst_89 = arith.constant dense<0.000000e+00> : vector<8xf32>
    %195 = vector.multi_reduction <add>, %194, %cst_89 [1] : vector<8x32xf32> to vector<8xf32>
    %196 = vector.shape_cast %195 : vector<8xf32> to vector<8x1xf32>
    %cst_90 = arith.constant 3.100000e+01 : f32
    %197 = vector.broadcast %cst_90 : f32 to vector<8x1xf32>
    %198 = arith.divf %196, %197 : vector<8x1xf32>
    %199 = math.sqrt %198 : vector<8x1xf32>
    %200 = vector.broadcast %191 : vector<8x1xf32> to vector<8x32xf32>
    %201 = arith.subf %187, %200 : vector<8x32xf32>
    %cst_91 = arith.constant 9.99999997E-7 : f32
    %202 = vector.broadcast %cst_91 : f32 to vector<8x1xf32>
    %203 = arith.addf %199, %202 : vector<8x1xf32>
    %204 = vector.broadcast %203 : vector<8x1xf32> to vector<8x32xf32>
    %205 = arith.divf %201, %204 : vector<8x32xf32>
    %206 = vector.broadcast %23 : vector<1x32xf32> to vector<8x32xf32>
    %207 = arith.mulf %206, %205 : vector<8x32xf32>
    %208 = vector.broadcast %25 : vector<1x32xf32> to vector<8x32xf32>
    %209 = arith.addf %207, %208 : vector<8x32xf32>
    %c0_92 = arith.constant 0 : index
    %c0_93 = arith.constant 0 : index
    %210 = vector.load %arg17[%c0_92, %c0_93] : memref<8x32xf32, #tpu.memory_space<vmem>>, vector<8x32xf32>
    tpu.vector_store %arg17[%c0_92, %c0_93], %209 {strides = array<i32>} : memref<8x32xf32, #tpu.memory_space<vmem>>, vector<8x32xf32>,
    return
  }
  func.func @transform_0(%arg0: i32, %arg1: i32) -> (i32, i32) {
    %c0_i32 = arith.constant 0 : i32
    %c0_i32_0 = arith.constant 0 : i32
    return %arg0, %c0_i32 : i32, i32
  }
  func.func @transform_1(%arg0: i32, %arg1: i32) -> (i32, i32, i32) {
    %c0_i32 = arith.constant 0 : i32
    %c0_i32_0 = arith.constant 0 : i32
    %c0_i32_1 = arith.constant 0 : i32
    return %arg0, %c0_i32, %c0_i32_0 : i32, i32, i32
  }
  func.func @transform_2(%arg0: i32, %arg1: i32) -> (i32, i32, i32) {
    %c0_i32 = arith.constant 0 : i32
    %c0_i32_0 = arith.constant 0 : i32
    %c0_i32_1 = arith.constant 0 : i32
    return %arg1, %c0_i32, %c0_i32_0 : i32, i32, i32
  }
  func.func @transform_3(%arg0: i32, %arg1: i32) -> (i32, i32, i32) {
    %c0_i32 = arith.constant 0 : i32
    %c0_i32_0 = arith.constant 0 : i32
    %c0_i32_1 = arith.constant 0 : i32
    return %arg1, %c0_i32, %c0_i32_0 : i32, i32, i32
  }
  func.func @transform_4(%arg0: i32, %arg1: i32) -> (i32, i32, i32) {
    %c0_i32 = arith.constant 0 : i32
    %c0_i32_0 = arith.constant 0 : i32
    %c0_i32_1 = arith.constant 0 : i32
    return %arg1, %c0_i32, %c0_i32_0 : i32, i32, i32
  }
  func.func @transform_5(%arg0: i32, %arg1: i32) -> (i32, i32, i32) {
    %c0_i32 = arith.constant 0 : i32
    %c0_i32_0 = arith.constant 0 : i32
    %c0_i32_1 = arith.constant 0 : i32
    return %arg1, %c0_i32, %c0_i32_0 : i32, i32, i32
  }
  func.func @transform_6(%arg0: i32, %arg1: i32) -> (i32, i32, i32) {
    %c0_i32 = arith.constant 0 : i32
    %c0_i32_0 = arith.constant 0 : i32
    %c0_i32_1 = arith.constant 0 : i32
    return %arg1, %c0_i32, %c0_i32_0 : i32, i32, i32
  }
  func.func @transform_7(%arg0: i32, %arg1: i32) -> (i32, i32, i32) {
    %c0_i32 = arith.constant 0 : i32
    %c0_i32_0 = arith.constant 0 : i32
    %c0_i32_1 = arith.constant 0 : i32
    return %arg1, %c0_i32, %c0_i32_0 : i32, i32, i32
  }
  func.func @transform_8(%arg0: i32, %arg1: i32) -> (i32, i32, i32) {
    %c0_i32 = arith.constant 0 : i32
    %c0_i32_0 = arith.constant 0 : i32
    %c0_i32_1 = arith.constant 0 : i32
    return %arg1, %c0_i32, %c0_i32_0 : i32, i32, i32
  }
  func.func @transform_9(%arg0: i32, %arg1: i32) -> (i32, i32, i32) {
    %c0_i32 = arith.constant 0 : i32
    %c0_i32_0 = arith.constant 0 : i32
    %c0_i32_1 = arith.constant 0 : i32
    return %arg1, %c0_i32, %c0_i32_0 : i32, i32, i32
  }
  func.func @transform_10(%arg0: i32, %arg1: i32) -> (i32, i32, i32) {
    %c0_i32 = arith.constant 0 : i32
    %c0_i32_0 = arith.constant 0 : i32
    %c0_i32_1 = arith.constant 0 : i32
    return %arg1, %c0_i32, %c0_i32_0 : i32, i32, i32
  }
  func.func @transform_11(%arg0: i32, %arg1: i32) -> (i32, i32, i32) {
    %c0_i32 = arith.constant 0 : i32
    %c0_i32_0 = arith.constant 0 : i32
    %c0_i32_1 = arith.constant 0 : i32
    return %arg1, %c0_i32, %c0_i32_0 : i32, i32, i32
  }
  func.func @transform_12(%arg0: i32, %arg1: i32) -> (i32, i32, i32) {
    %c0_i32 = arith.constant 0 : i32
    %c0_i32_0 = arith.constant 0 : i32
    %c0_i32_1 = arith.constant 0 : i32
    return %arg1, %c0_i32, %c0_i32_0 : i32, i32, i32
  }
  func.func @transform_13(%arg0: i32, %arg1: i32) -> (i32, i32, i32) {
    %c0_i32 = arith.constant 0 : i32
    %c0_i32_0 = arith.constant 0 : i32
    %c0_i32_1 = arith.constant 0 : i32
    return %arg1, %c0_i32, %c0_i32_0 : i32, i32, i32
  }
  func.func @transform_14(%arg0: i32, %arg1: i32) -> (i32, i32, i32) {
    %c0_i32 = arith.constant 0 : i32
    %c0_i32_0 = arith.constant 0 : i32
    %c0_i32_1 = arith.constant 0 : i32
    return %arg1, %c0_i32, %c0_i32_0 : i32, i32, i32
  }
  func.func @transform_15(%arg0: i32, %arg1: i32) -> (i32, i32) {
    %c0_i32 = arith.constant 0 : i32
    %c0_i32_0 = arith.constant 0 : i32
    return %arg0, %c0_i32 : i32, i32
  }
}

</mosaic_0001>

<bundles_post_ra>
// kernel: tpu_custom_call.1
= control target key start
LH: loop header
LB: loop body
LE: loop exit
PB: predicated region body
PF: predicated region fallthrough
CT: control target
= control target key end

     0   :  { %s3388_s0 = inlined_call_operand.hbm [shape: f32[16,32], index: 0, kind: input, shape index: {}]   ;;  %s3389_s1 = inlined_call_operand.vmem [shape: f32[2,1,8], index: 1, kind: input, shape index: {}]   ;;  %s3390_s2 = inlined_call_operand.vmem [shape: bf16[2,32,32], index: 2, kind: input, shape index: {}]   ;;  %s3391_s3 = inlined_call_operand.vmem [shape: bf16[2,32,32], index: 3, kind: input, shape index: {}]   ;;  %s3392_s4 = inlined_call_operand.vmem [shape: bf16[2,32,32], index: 4, kind: input, shape index: {}]   ;;  %s3393_s5 = inlined_call_operand.hbm [shape: bf16[2,32,32], index: 5, kind: input, shape index: {}]   ;;  %s3394_s6 = inlined_call_operand.vmem [shape: f32[2,1,32], index: 6, kind: input, shape index: {}]   ;;  %s3395_s7 = inlined_call_operand.vmem [shape: f32[2,1,32], index: 7, kind: input, shape index: {}]   ;;  %s3396_s8 = inlined_call_operand.vmem [shape: f32[2,1,32], index: 8, kind: input, shape index: {}]   ;;  %s3397_s9 = inlined_call_operand.hbm [shape: bf16[2,32,64], index: 9, kind: input, shape index: {}]   ;;  %s3398_s10 = inlined_call_operand.hbm [shape: f32[2,1,64], index: 10, kind: input, shape index: {}]   ;;  %s3399_s11 = inlined_call_operand.vmem [shape: bf16[2,64,32], index: 11, kind: input, shape index: {}]   ;;  %s3400_s12 = inlined_call_operand.vmem [shape: f32[2,1,32], index: 12, kind: input, shape index: {}]   ;;  %s3401_s13 = inlined_call_operand.vmem [shape: f32[2,1,32], index: 13, kind: input, shape index: {}]   ;;  %s3402_s14 = inlined_call_operand.vmem [shape: f32[2,1,32], index: 14, kind: input, shape index: {}]   ;;  %s3403_s15 = inlined_call_operand.hbm [shape: f32[16,32], index: 15, kind: output, shape index: {}]  }
   0x1   :  { %3437 = sst [smem:[#allocation35_spill]] %s3388_s0 }
   0x2   :  { %3438 = sst [smem:[#allocation36_spill]] %s3389_s1 }
   0x3   :  { %3439 = sst [smem:[#allocation37_spill]] %s3390_s2 }
   0x4   :  { %3440 = sst [smem:[#allocation38_spill]] %s3391_s3 }
   0x5   :  { %3441 = sst [smem:[#allocation39_spill]] %s3392_s4 }
   0x6   :  { %3442 = sst [smem:[#allocation40_spill]] %s3393_s5 }
   0x7   :  { %3443 = sst [smem:[#allocation41_spill]] %s3394_s6 }
   0x8   :  { %3444 = sst [smem:[#allocation42_spill]] %s3395_s7 }
   0x9   :  { %3445 = sst [smem:[#allocation43_spill]] %s3396_s8 }
   0xa   :  { %3446 = sst [smem:[#allocation44_spill]] %s3397_s9 }
   0xb   :  { %3447 = sst [smem:[#allocation45_spill]] %s3398_s10 }
   0xc   :  { %3448 = sst [smem:[#allocation46_spill]] %s3399_s11 }
   0xd   :  { %3449 = sst [smem:[#allocation47_spill]] %s3400_s12 }
   0xe   :  { %3450 = sst [smem:[#allocation48_spill]] %s3401_s13 }
   0xf   :  { %3451 = sst [smem:[#allocation49_spill]] %s3402_s14 }
  0x10   :  { %3452 = sst [smem:[#allocation50_spill]] %s3403_s15 }
  0x11   :  { %20 = vsyncpa [#allocation5], 0 }
  0x12   :  { %22 = vsyncpa [#allocation5 + $0x1], 0 }
  0x13   :  { %23 = vsyncpa [#allocation8], 0 }
  0x14   :  { %25 = vsyncpa [#allocation8 + $0x1], 0 }
  0x15   :  { %26 = vsyncpa [#allocation11], 0 }
  0x16   :  { %28 = vsyncpa [#allocation11 + $0x1], 0 }
  0x17   :  { %29 = vsyncpa [#allocation6], 0 }
  0x18   :  { %31 = vsyncpa [#allocation6 + $0x1], 0  ;;  %s2774_s18 = smov 0   ;;  %s2776_s19 = smov 0  }
  0x19   :  { %s2778_s20 = smov 0   ;;  %s2780_s21 = smov 0  }
  0x1a   :  { %s2782_s22 = smov 0   ;;  %s2784_s23 = smov 0  }
  0x1b   :  { %s2786_s24 = smov 0   ;;  %s2788_s25 = smov 0  }
  0x1c   :  { %s2790_s26 = smov 0   ;;  %s2792_s27 = smov 0  }
  0x1d   :  { %s2794_s28 = smov 0  }
  0x1e LB: > { %3453 = sst [smem:[#allocation17_spill]] %s2640_s19  ;;  %p3408_p0 = scmp.eq.s32.totalorder %s2676_s28, 0  ;;  %s2676_s28 = sphi %s2794_s28, %s37_s28   ;;  %s2672_s27 = sphi %s2792_s27, %s3539_s27   ;;  %s2668_s26 = sphi %s2790_s26, %s3538_s26   ;;  %s2664_s25 = sphi %s2788_s25, %s3537_s25   ;;  %s2660_s24 = sphi %s2786_s24, %s3536_s24   ;;  %s2656_s23 = sphi %s2784_s23, %s3535_s23   ;;  %s2652_s22 = sphi %s2782_s22, %s3534_s22   ;;  %s2648_s21 = sphi %s2780_s21, %s3533_s21   ;;  %s2644_s20 = sphi %s2778_s20, %s3532_s20   ;;  %s2640_s19 = sphi %s2776_s19, %s3531_s19   ;;  %s2636_s18 = sphi %s2774_s18, %s3530_s18  }
  0x1f   : > { %3454 = sst [smem:[#allocation18_spill]] %s2644_s20  ;;  %p193_p1 = scmp.ne.s32.totalorder %s2644_s20, %s2640_s19 }
  0x20   : > { %3455 = sst [smem:[#allocation19_spill]] %s2648_s21  ;;  %p3407_p2 = scmp.lt.s32.totalorder %s2676_s28, 4 }
  0x21   : > { %3456 = sst [smem:[#allocation20_spill]] %s2652_s22  ;;  %s531_s30 = sand.u32 1, %s2676_s28  }
  0x22   : > { %3457 = sst [smem:[#allocation21_spill]] %s2656_s23  ;;  %p195_p3 = por %p193_p1, %p3408_p0 }
  0x23   : > { %3458 = sst [smem:[#allocation22_spill]] %s2660_s24  ;;  %s2838_s16 = sand.u32 1, %s2644_s20  }
  0x24   : > { %3459 = sst [smem:[#allocation23_spill]] %s2664_s25  ;;  %s3405_s17 = sshll.u32 %s2668_s26, 8 }
  0x25   : > { %3460 = sst [smem:[#allocation24_spill]] %s2668_s26  ;;  %s3406_s15 = sshll.u32 %s2838_s16, 4 }
  0x26   : > { %3461 = sst [smem:[#allocation25_spill]] %s2672_s27  ;;  %p2851_p4 = pnand %p3407_p2, %p195_p3 }
  0x27   : > { %3462 = sst [smem:[#allocation26_spill]] %s2676_s28  ;;  %s535_s11 = scalar_lea.vmem [#allocation7], %s3406_s15 }
  0x28   : > { %s3463_s5 = sld [smem:[#allocation40_spill]]  ;;  %s542_s8 = sshll.u32 %s535_s11, 4  ;;  %s2857_s8 = int_to_ptr.vmem [resolvable:$true] %s542_s8 }
  0x29   : > { %s3464_s29 = scalar_select %p2851_p4, 1, 0 }
  0x2a   : > { %s2859_s7 = scalar_lea.sflag [#allocation8], %s531_s30  ;;  %p2865_p6 = pneg %p2851_p4 }
  0x2e   : > { %s2847_s12 = scalar_lea.hbm %s3463_s5, %s3405_s17  ;;  %s2431_s15 = scalar_lea.hbm %s3463_s5, 512 }
  0x2f   : > { %s2426_s13 = scalar_lea.hbm %s2847_s12, 256  ;;  %p2432_p9 = scmp.lt.u32.totalorder %s2847_s12, %s3463_s5 }
  0x30   : > { %p2427_p5 = scmp.ne.s32.totalorder %s2847_s12, %s2426_s13  ;;  %p2433_p10 = scmp.lt.u32.totalorder %s2431_s15, %s2426_s13 }
  0x31   : > { %p2435_p12 = scmp.lt.u32.totalorder %s2426_s13, %s2847_s12 }
  0x32   : > { %p2429_p7 = pnand %p2865_p6, %p2427_p5  ;;  %p2434_p11 = por %p2433_p10, %p2432_p9 }
  0x34   : > { %p2430_p8 = pneg %p2429_p7  ;;  %p2436_p13 = por %p2435_p12, %p2434_p11 }
  0x36   : > { %p2437_p1 = pnand %p2436_p13, %p2430_p8 }
  0x38   : > { %2440 = shalt.err (!%p2437_p1)
}
  0x39   : > { %s2441_s30 = scalar_lea.vmem %s2857_s8, 256  ;;  %s2678_s4 = smov [#allocation7]  }
  0x3a   : > { %p2442_p3 = scmp.ne.s32.totalorder %s2857_s8, %s2441_s30  ;;  %s2446_s17 = sshll.u32 %s2678_s4, 4  ;;  %s2447_s17 = int_to_ptr.vmem [resolvable:$false] %s2446_s17 }
  0x3b   : > { %s2448_s3 = scalar_lea.vmem %s2447_s17, 512  ;;  %p2449_p2 = scmp.lt.s32.totalorder %s2857_s8, %s2447_s17 }
  0x3c   : > { %p2444_p5 = pnand %p2442_p3, %p2865_p6  ;;  %p2450_p0 = scmp.lt.s32.totalorder %s2448_s3, %s2441_s30 }
  0x3e   : > { %p2445_p7 = pneg %p2444_p5  ;;  %p2451_p9 = por %p2450_p0, %p2449_p2 }
  0x40   : > { %p2452_p10 = pnand %p2451_p9, %p2445_p7 }
  0x42   : > { %2455 = shalt.err (!%p2452_p10)
}
  0x43   : > { %s3409_s15 = smov 64   ;;  %s3410_s13 = smov 4  }
  0x44   : > { %2276 = dma.hbm_to_vmem [thread:$0]  (!%p2851_p4), %s2847_s12, 256, %s2857_s8, %s2859_s7, %s3409_s15, %s3409_s15, %s3410_s13  }
  0x45   : > { %s3466_s11 = sshll.u32 %s2668_s26, 8  ;;  %s3467_s9 = sld [smem:[#allocation44_spill]] }
  0x46   : > { %s3468_s3 = sshll.u32 %s2838_s16, 4  ;;  %p2063_p0 = scmp.ge.s32.totalorder %s2676_s28, 1 }
  0x47   : > { %s574_s5 = scalar_lea.vmem [#allocation9], %s3468_s3  ;;  %p632_p2 = scmp.lt.s32.totalorder %s2676_s28, 5 }
  0x48   : > { %s581_s2 = sshll.u32 %s574_s5, 4  ;;  %s2910_s12 = sadd.s32 4294967295, %s2676_s28   ;;  %s2901_s2 = int_to_ptr.vmem [resolvable:$true] %s581_s2 }
  0x49   : > { %p2905_p8 = pnand %p2063_p0, %p632_p2  ;;  %s46_s30 = sadd.s32 1, %s2668_s26 }
  0x4a   : > { %s49_s5 = sadd.s32 1, %s2672_s27  ;;  %p47_p11 = scmp.ge.s32.totalorder %s46_s30, 2 }
  0x4b   : > { %s2897_s17 = scalar_lea.hbm %s3467_s9, %s3466_s11  ;;  %s2051_s11 = sadd.s32 4294967294, %s2676_s28  }
  0x4c   : > { %s3469_s8 = scalar_select %p2905_p8, 1, 0 }
  0x4d   : > { %s56_s4 = sadd.s32 1, %s2656_s23  ;;  %p63_p12 = scmp.ne.s32.totalorder %s2656_s23, %s2652_s22 }
  0x4e   : > { %p3413_p13 = scmp.ne.s32.totalorder %s2652_s22, %s2648_s21  ;;  %s3541_s30 = smov (%p47_p11, %s46_s30), 0 }
  0x4f   : > { %3470 = sst [smem:[#allocation27_spill]] %s3541_s30  ;;  %s3543_s5 = smov (!%p47_p11, %s49_s5), %s2672_s27 }
  0x50   : > { %p3471_p1 = scmp.eq.s32.totalorder %s2676_s28, 0  ;;  %p70_p5 = scmp.eq.s32.totalorder %s2910_s12, 0 }
  0x51   : > { %p51_p7 = scmp.ge.s32.totalorder %s3543_s5, 2  ;;  %s183_s15 = ssub.s32 %s2668_s26, %s3541_s30 }
  0x52   : > { %p2928_p3 = por %p3471_p1, %p63_p12  ;;  %p2938_p9 = por %p70_p5, %p3413_p13 }
  0x53   : > { %p184_p10 = scmp.eq.s32.totalorder %s183_s15, 0  ;;  %s3545_s5 = smov (%p51_p7, %s3543_s5), 0 }
  0x54   : > { %s3473_s13 = scalar_select %p2938_p9, 1, 0 }
  0x55   : > { %3474 = sst [smem:[#allocation28_spill]] %s3545_s5  ;;  %s3475_s6 = sadd.s32 1, %s2644_s20 }
  0x56   : > { %s2947_s1 = scalar_select %p184_p10, %s2644_s20, %s3475_s6  }
  0x57   : > { %s53_s24 = ssub.s32 %s2672_s27, %s3545_s5  ;;  %p199_p0 = scmp.ne.s32.totalorder %s2640_s19, %s2636_s18 }
  0x58   : > { %3476 = sst [smem:[#allocation29_spill]] %s2947_s1  ;;  %p54_p2 = scmp.eq.s32.totalorder %s53_s24, 0 }
  0x59   : > { %p457_p11 = scmp.eq.s32.totalorder %s2910_s12, 3  ;;  %p2954_p1 = por %p199_p0, %p70_p5 }
  0x5a   : > { %p463_p13 = scmp.eq.s32.totalorder %s2051_s11, 3  ;;  %p3482_p10 = scmp.ne.s32.totalorder %s2652_s22, %s2648_s21 }
  0x5b   : > { %s3477_s30 = scalar_select %p2954_p1, 1, 0 }
  0x5c   : > { %s2959_s25 = scalar_select %p54_p2, %s2656_s23, %s56_s4  }
  0x5d   : > { %3478 = sst [smem:[#allocation30_spill]] %s3477_s30  ;;  %p2964_p7 = por %p457_p11, %p63_p12 }
  0x5e   : > { %3479 = sst [smem:[#allocation31_spill]] %s2959_s25  ;;  %p2971_p9 = por %p463_p13, %p3482_p10 }
  0x5f   : > { %s3480_s15 = scalar_select %p2964_p7, 1, 0 }
  0x60   : > { %s3483_s6 = scalar_select %p2971_p9, 1, 0 }
  0x61   : > { %3481 = sst [smem:[#allocation32_spill]] %s3480_s15  ;;  %s483_s18 = sand.u32 1, %s2656_s23  }
  0x62   : > { %3484 = sst [smem:[#allocation33_spill]] %s3483_s6  ;;  %s2055_s24 = sshll.u32 %s2672_s27, 7 }
  0x63   : > { %s2054_s5 = sshll.u32 %s483_s18, 3  ;;  %s3485_s0 = sld [smem:[#allocation35_spill]] }
  0x64   : > { %s487_s11 = scalar_lea.vmem [#allocation4], %s2054_s5  ;;  %p3486_p12 = scmp.lt.s32.totalorder %s2676_s28, 4 }
  0x65   : > { %s494_s4 = sshll.u32 %s487_s11, 4  ;;  %s484_s27 = scalar_lea.sflag [#allocation5], %s483_s18  ;;  %s2990_s4 = int_to_ptr.vmem [resolvable:$true] %s494_s4 }
  0x66   : > { %p2986_p13 = pnand %p3486_p12, %p2928_p3 }
  0x68   : > { %p2458_p0 = pneg %p2986_p13 }
  0x69   : > { %s2980_s30 = scalar_lea.hbm %s3485_s0, %s2055_s24  ;;  %s2461_s3 = scalar_lea.hbm %s3485_s0, 256 }
  0x6a   : > { %s2456_s1 = scalar_lea.hbm %s2980_s30, 128  ;;  %p2462_p3 = scmp.lt.u32.totalorder %s2980_s30, %s3485_s0 }
  0x6b   : > { %p2457_p5 = scmp.ne.s32.totalorder %s2980_s30, %s2456_s1  ;;  %p2463_p10 = scmp.lt.u32.totalorder %s2461_s3, %s2456_s1 }
  0x6c   : > { %p2465_p9 = scmp.lt.u32.totalorder %s2456_s1, %s2980_s30 }
  0x6d   : > { %p2459_p2 = pnand %p2458_p0, %p2457_p5  ;;  %p2464_p12 = por %p2463_p10, %p2462_p3 }
  0x6f   : > { %p2460_p11 = pneg %p2459_p2  ;;  %p2466_p7 = por %p2465_p9, %p2464_p12 }
  0x71   : > { %p2467_p1 = pnand %p2466_p7, %p2460_p11 }
  0x73   : > { %2470 = shalt.err (!%p2467_p1)
}
  0x74   : > { %s2471_s18 = scalar_lea.vmem %s2990_s4, 128  ;;  %s2681_s20 = smov [#allocation4]  }
  0x75   : > { %p2472_p5 = scmp.ne.s32.totalorder %s2990_s4, %s2471_s18  ;;  %s2476_s5 = sshll.u32 %s2681_s20, 4  ;;  %s2477_s5 = int_to_ptr.vmem [resolvable:$false] %s2476_s5 }
  0x76   : > { %s2478_s24 = scalar_lea.vmem %s2477_s5, 256  ;;  %p2479_p4 = scmp.lt.s32.totalorder %s2990_s4, %s2477_s5 }
  0x77   : > { %p2474_p2 = pnand %p2472_p5, %p2458_p0  ;;  %p2480_p3 = scmp.lt.s32.totalorder %s2478_s24, %s2471_s18 }
  0x79   : > { %p2475_p8 = pneg %p2474_p2  ;;  %p2481_p10 = por %p2480_p3, %p2479_p4 }
  0x7b   : > { %p2482_p9 = pnand %p2481_p10, %p2475_p8 }
  0x7d   : > { %2485 = shalt.err (!%p2482_p9)
}
  0x7e   : > { %2273 = dma.hbm_to_vmem [thread:$0]  (!%p2986_p13), %s2980_s30, 128, %s2990_s4, %s484_s27  }
  0x7f   : > { %s2486_s1 = scalar_lea.hbm %s2897_s17, 256  ;;  %s2491_s18 = scalar_lea.hbm %s3467_s9, 512 }
  0x80   : > { %p2487_p1 = scmp.ne.s32.totalorder %s2897_s17, %s2486_s1  ;;  %p2492_p4 = scmp.lt.u32.totalorder %s2897_s17, %s3467_s9 }
  0x81   : > { %p2493_p8 = scmp.lt.u32.totalorder %s2491_s18, %s2486_s1  ;;  %p2495_p12 = scmp.lt.u32.totalorder %s2486_s1, %s2897_s17 }
  0x82   : > { %p2489_p7 = pnand %p2487_p1, %p2865_p6 }
  0x83   : > { %p2494_p11 = por %p2493_p8, %p2492_p4 }
  0x84   : > { %p2490_p0 = pneg %p2489_p7 }
  0x85   : > { %p2496_p5 = por %p2495_p12, %p2494_p11 }
  0x87   : > { %p2497_p2 = pnand %p2496_p5, %p2490_p0 }
  0x89   : > { %2500 = shalt.err (!%p2497_p2)
}
  0x8a   : > { %s2501_s25 = scalar_lea.vmem %s2901_s2, 256  ;;  %s2682_s27 = smov [#allocation9]  }
  0x8b   : > { %p2502_p13 = scmp.ne.s32.totalorder %s2901_s2, %s2501_s25  ;;  %s2506_s30 = sshll.u32 %s2682_s27, 4  ;;  %s2507_s30 = int_to_ptr.vmem [resolvable:$false] %s2506_s30 }
  0x8c   : > { %s2508_s4 = scalar_lea.vmem %s2507_s30, 512  ;;  %p2509_p9 = scmp.lt.s32.totalorder %s2901_s2, %s2507_s30 }
  0x8d   : > { %p2504_p3 = pnand %p2502_p13, %p2865_p6  ;;  %p2510_p1 = scmp.lt.s32.totalorder %s2508_s4, %s2501_s25 }
  0x8f   : > { %p2505_p10 = pneg %p2504_p3  ;;  %p2511_p7 = por %p2510_p1, %p2509_p9 }
  0x91   : > { %p2512_p4 = pnand %p2511_p7, %p2505_p10 }
  0x93   : > { %2515 = shalt.err (!%p2512_p4)
}
  0x94   : > { %p3488_p0 = scmp.ne.s32.totalorder %s3464_s29, 0  ;;  %s3489_s24 = smov 4  }
  0x95   : > { %s3490_s1 = smov 64   ;;  %s2062_s3 = sshll.u32 %s2668_s26, 4 }
  0x96   : > { %2279 = dma.hbm_to_vmem [thread:$0]  (!%p3488_p0), %s2897_s17, 256, %s2901_s2, %s2859_s7, %s3490_s1, %s3490_s1, %s3489_s24  }
  0x97   : > { %s594_s11 = scalar_lea.vmem [#allocation10], %s2838_s16  ;;  %s3491_s10 = sld [smem:[#allocation45_spill]] }
  0x98   : > { %s601_s18 = sshll.u32 %s594_s11, 4  ;;  %s592_s27 = scalar_lea.sflag [#allocation11], %s2838_s16  ;;  %s602_s18 = int_to_ptr.vmem [resolvable:$true] %s601_s18 }
  0x9d   : > { %s3047_s25 = scalar_lea.hbm %s3491_s10, %s2062_s3  ;;  %s2521_s17 = scalar_lea.hbm %s3491_s10, 32 }
  0x9e   : > { %s2516_s30 = scalar_lea.hbm %s3047_s25, 16  ;;  %p2522_p5 = scmp.lt.u32.totalorder %s3047_s25, %s3491_s10 }
  0x9f   : > { %p2517_p8 = scmp.ne.s32.totalorder %s3047_s25, %s2516_s30  ;;  %p2523_p2 = scmp.lt.u32.totalorder %s2521_s17, %s2516_s30 }
  0xa0   : > { %p2525_p3 = scmp.lt.u32.totalorder %s2516_s30, %s3047_s25 }
  0xa1   : > { %p2519_p11 = pnand %p2517_p8, %p2865_p6  ;;  %p2524_p13 = por %p2523_p2, %p2522_p5 }
  0xa3   : > { %p2520_p12 = pneg %p2519_p11  ;;  %p2526_p10 = por %p2525_p3, %p2524_p13 }
  0xa5   : > { %p2527_p9 = pnand %p2526_p10, %p2520_p12 }
  0xa7   : > { %2530 = shalt.err (!%p2527_p9)
}
  0xa8   : > { %s2531_s16 = scalar_lea.vmem %s602_s18, 16  ;;  %s2683_s1 = smov [#allocation10]  }
  0xa9   : > { %p2532_p1 = scmp.ne.s32.totalorder %s602_s18, %s2531_s16  ;;  %s2536_s3 = sshll.u32 %s2683_s1, 4  ;;  %s2537_s3 = int_to_ptr.vmem [resolvable:$false] %s2536_s3 }
  0xaa   : > { %s2538_s11 = scalar_lea.vmem %s2537_s3, 32  ;;  %p2539_p8 = scmp.lt.s32.totalorder %s602_s18, %s2537_s3 }
  0xab   : > { %p2534_p7 = pnand %p2532_p1, %p2865_p6  ;;  %p2540_p11 = scmp.lt.s32.totalorder %s2538_s11, %s2531_s16 }
  0xad   : > { %p2535_p4 = pneg %p2534_p7  ;;  %p2541_p0 = por %p2540_p11, %p2539_p8 }
  0xaf   : > { %p2542_p2 = pnand %p2541_p0, %p2535_p4 }
  0xb1   : > { %2545 = shalt.err (!%p2542_p2)
}
  0xb2   : > { %p3492_p5 = scmp.ne.s32.totalorder %s3464_s29, 0  ;;  %p3493_p12 = scmp.ne.s32.totalorder %s3469_s8, 0 }
  0xb4   : > { %2282 = dma.hbm_to_vmem [thread:$0]  (!%p3492_p5), %s3047_s25, 16, %s602_s18, %s592_s27  }
  0xb5   : > { %636 = sbr.rel (%p3493_p12) target bundleno = 2779 (0xadb), region = 80 }
  0xbc   : > { %s3070_s14 = sand.u32 1, %s2652_s22   ;;  %p3494_p6 = scmp.ne.s32.totalorder %s3473_s13, 0 }
  0xbd   : > { %s3425_s20 = sshll.u32 %s3070_s14, 3  ;;  %s639_s5 = scalar_lea.sflag [#allocation5], %s3070_s14 }
  0xbe   : > { %s3076_s30 = scalar_lea.vmem [#allocation4], %s3425_s20 }
  0xbf   : > { %2619 = dma.done.wait (%p3494_p6), %s639_s5, 128  }
  0xc0   : > { %2621 = vsyncadd (%p3494_p6), %s639_s5, 4294967168  ;;  %s3495_s29 = sld [smem:[#allocation30_spill]]  ;;  %s647_s8 = sand.u32 1, %s2910_s12  }
  0xc1   : > { %s3084_s18 = sand.u32 1, %s2640_s19   ;;  %s648_s27 = scalar_lea.sflag [#allocation8], %s647_s8 }
  0xc2   : > { %3496 = sst [smem:[#allocation34_spill]] %s3084_s18  ;;  %s2065_s25 = sshll.u32 %s3084_s18, 4 }
  0xc3   : > { %s3087_s2 = scalar_lea.vmem [#allocation7], %s2065_s25 }
  0xc6   : > { %p3497_p0 = scmp.ne.s32.totalorder %s3495_s29, 0 }
  0xc8   : > { %2623 = dma.done.wait (%p3497_p0), %s648_s27, 512  }
  0xc9   : > { %2625 = vsyncadd (%p3497_p0), %s648_s27, 4294966784  ;;  %s3093_s13 = scalar_lea.vmem [#allocation9], %s2065_s25  ;;  %s666_s7 = scalar_lea.sflag [#allocation11], %s3084_s18 }
  0xca   : > { %2627 = dma.done.wait (%p3497_p0), %s666_s7, 16  }
  0xcb   : > { %2629 = vsyncadd (%p3497_p0), %s666_s7, 4294967280  ;;  %s3498_s12 = sld [smem:[#allocation23_spill]]  ;;  %s3499_s4 = sld [smem:[#allocation22_spill]] }
  0xcc   : > { %s3500_s3 = sld [smem:[#allocation36_spill]]  ;;  %s3502_s20 = sld [smem:[#allocation37_spill]] }
  0xcd   : > { %s3503_s9 = sld [smem:[#allocation38_spill]]  ;;  %s3504_s22 = sld [smem:[#allocation39_spill]] }
  0xce   : > { %s3506_s27 = sld [smem:[#allocation43_spill]]  ;;  %s3507_s28 = sld [smem:[#allocation46_spill]] }
  0xcf   : > { %s3508_s15 = sld [smem:[#allocation47_spill]]  ;;  %s3511_s8 = sshll.u32 %s3070_s14, 3 }
  0xd1   : > { %p770_p13 = scmp.lt.s32.totalorder %s3498_s12, 1  ;;  %p773_p3 = scmp.lt.s32.totalorder %s3499_s4, 1 }
  0xd2   : > { %p2076_p10 = scmp.ne.s32.totalorder %s3499_s4, 0 }
  0xd3   : > { %s3547_s12 = smov (!%p770_p13, %s3498_s12), 1  ;;  %v816_v0 = vld [vmem:[%s3076_s30] sm:$0xff] (!%p2076_p10)  ;;  %vm817_vm0 = vcmask (!%p2076_p10), 261120   ;;  %v819_v1 = vlaneseq (!%p2076_p10)  ;;  %v2684_v5 = vmov (!%p2076_p10), 0.0   ;;  %vm837_vm3 = vcmask (!%p2076_p10), 64512  }
  0xd4   : > { %s3105_s24 = scalar_select %p773_p3, %s3499_s4, 1 }
  0xd5   : > { %s772_s11 = scalar_lea.vmem %s3500_s3, %s3547_s12  ;;  %s3510_s3 = sld [smem:[#allocation49_spill]]  ;;  %v820_v3 = vshrl.u32 (!%p2076_p10), %v819_v1, 7  ;;  %v822_v4 = vand.u32 (!%p2076_p10), 127, %v819_v1 }
  0xd6   : > { %s2120_s5 = sshll.u32 %s3105_s24, 4  ;;  %s796_s17 = scalar_lea.vmem %s3506_s27, %s3105_s24  ;;  %v826_v2 = vld [vmem:[%s772_s11] sm:$0x1] (!%p2076_p10) }
  0xd7   : > { %s3118_s0 = scalar_lea.vmem %s3502_s20, %s2120_s5  ;;  %s3123_s10 = scalar_lea.vmem %s3503_s9, %s2120_s5  ;;  %vm827_vm1 = vcmp.gt.f32.partialorder (!%p2076_p10), %v826_v2, 0.5  ;;  %vm823_vm2 = vcmp.gt.s32.totalorder (!%p2076_p10), %v822_v4, %v820_v3  ;;  %v833_v7 = vsub.s32 (!%p2076_p10), 0, %v820_v3 }
  0xd8   : > { %s3128_s19 = scalar_lea.vmem %s3504_s22, %s2120_s5  ;;  %s2123_s20 = sshll.u32 %s3105_s24, 5  ;;  %v2078_v6 = vsel (!%p2076_p10), %vm827_vm1, 1.0, %v2684_v5  ;;  %v2077_v8 = vsel (!%p2076_p10), %vm823_vm2, 1.0, %v2684_v5 }
  0xd9   : > { %s3142_s16 = scalar_lea.vmem %s3507_s28, %s2123_s20  ;;  %s804_s23 = scalar_lea.vmem %s3508_s15, %s3105_s24  ;;  %v834_v9 = vrot.slane (!%p2076_p10), %v2078_v6, %v833_v7 }
  0xda   : > { %s3509_s5 = sld [smem:[#allocation48_spill]]  ;;  %s3158_s27 = scalar_lea.vmem [#allocation12], %s3511_s8 }
  0xdb   : > { %s810_s29 = scalar_lea.vmem %s3510_s3, %s3105_s24  ;;  %815 = sbr.rel (%p2076_p10) target bundleno = 226 (0xe2), region = 100  ;;  %818 = vst.msk [vmem:[%s3158_s27] sm:$0xff] (!%p2076_p10), %vm817_vm0, %v816_v0  ;;  %v836_v10 = vmax.f32 (!%p2076_p10), %v2077_v8, %v834_v9 }
  0xdd   : > { %838 = vst.msk [vmem:[#allocation2] sm:$0xff] (!%p2076_p10), %vm837_vm3, %v836_v10 }
  0xe0   : > { %s807_s18 = scalar_lea.vmem %s3509_s5, %s3105_s24 }
  0xe2 PF: > { %v2388_v11 = vld [vmem:[%s3123_s10] sm:$0xff]   ;;  %v2685_v12 = vmov 0.0   ;;  %v2390_v14 = vld [vmem:[%s3123_s10 + $0x8] sm:$0xff]   ;;  %vm2686_vm4 = vmmov 0   ;;  %vm878_vm5 = vcmask 261120   ;;  %vm1036_vm6 = vcmask 64512  }
  0xe3   : > { %2168 = vmatprep.subr.bf16.mxu1 %v2685_v12  ;;  %2160 = vmatprep.subr.bf16.mxu0 %v2685_v12  ;;  %v2389_v13 = vld [vmem:[%s3118_s0] sm:$0xff]   ;;  %v2391_v16 = vld [vmem:[%s3118_s0 + $0x8] sm:$0xff]   ;;  %s2687_s0 = smov 112   ;;  %s2688_s10 = smov 120   ;;  %vm1101_vm8 = vcmask 1043456   ;;  %vm1265_vm9 = vcmask 130112  }
  0xe4   : > { %2169 = vmatpush3.bf16.msra.mxu1 %v2388_v11  ;;  %2172 = vmatprep.mubr.msk.bf16.mxu1 %vm2686_vm4, %v2685_v12  ;;  %v3172_v15 = vld [vmem:[%s3158_s27] sm:$0xff]  ;;  %s2689_s21 = smov 104   ;;  %s2691_s28 = smov 16   ;;  %vm1383_vm10 = vcmask 195712   ;;  %vm1501_vm11 = vcmask 261312   ;;  %vm1701_vm14 = vcmask 523264  }
  0xe5   : > { %2170 = vmatprep.subr.bf16.mxu1 %v2685_v12  ;;  %2161 = vmatpush3.bf16.msra.mxu0 %v2389_v13  ;;  %v840_v17 = vpack.c.bf16 %v3172_v15, %v3172_v15  ;;  %v2392_v29 = vld [vmem:[%s3128_s19] sm:$0xff]   ;;  %v2393_v30 = vld [vmem:[%s3128_s19 + $0x8] sm:$0xff]   ;;  %s2690_s19 = smov 8   ;;  %s2692_s15 = smov 24  }
  0xe6   : > { %2162 = vmatprep.subr.bf16.mxu0 %v2685_v12  ;;  %2164 = vmatprep.mubr.msk.bf16.mxu0 %vm2686_vm4, %v2685_v12  ;;  %v841_v40 = vld [vmem:[#allocation2] sm:$0xff]  ;;  %s3512_s4 = sld [smem:[#allocation41_spill]]  ;;  %s3515_s7 = sld [smem:[#allocation42_spill]] }
  0xe7   : > { %vm842_vm7 = vcmp.gt.f32.partialorder %v841_v40, 0.5 }
  0xe8   : > { %2171 = vmatpush3.bf16.msra.mxu1 %v2390_v14 }
  0xe9   : > { %2163 = vmatpush3.bf16.msra.mxu0 %v2391_v16  ;;  %2184 = vmatprep.subr.bf16.mxu1 %v2685_v12 }
  0xea   : > { %2176 = vmatprep.subr.bf16.mxu0 %v2685_v12 }
  0xeb   : > { %2173 = vmatmul.mubr.msk.bf16.vlgmr.msra.gmra.mrb[0].mxu1 %vm878_vm5, %v840_v17 }
  0xec   : > { %2165 = vmatmul.mubr.msk.bf16.vlgmr.msra.gmra.mrb[0].mxu0 %vm878_vm5, %v840_v17  ;;  %2186 = vmatprep.mubr.msk.bf16.mxu1 %vm2686_vm4, %v2685_v12  ;;  %s3513_s11 = scalar_lea.vmem %s3512_s4, %s3105_s24  ;;  %s3516_s9 = scalar_lea.vmem %s3515_s7, %s3105_s24 }
  0xed   : > { %2180 = vmatprep.mubr.msk.bf16.mxu0 %vm2686_vm4, %v2685_v12  ;;  %2177 = vmatpush3.bf16.msra.mxu0 %v2392_v29  ;;  %s3524_s4 = sld [smem:[#allocation50_spill]]  ;;  %s2693_s24 = smov [#allocation12]  }
  0xee   : > { %2178 = vmatprep.subr.bf16.mxu0 %v2685_v12 }
  0xf1   : > { %2179 = vmatpush3.bf16.msra.mxu0 %v2393_v30 }
  0xf2   : > { %2190 = vmatprep.subr.bf16.mxu0 %v2685_v12 }
  0xf4   : > { %2181 = vmatmul.mubr.msk.bf16.vlgmr.msra.gmra.mrb[4].mxu0 %vm878_vm5, %v840_v17 }
  0xf5   : > { %2192 = vmatprep.mubr.msk.bf16.mxu0 %vm2686_vm4, %v2685_v12 }
 0x1be   : > { %v972_v18 = vpop.f32.mrb[0].mxu1 }
 0x1bf   : > { %v1035_v19 = vpack.c.bf16 %v972_v18, %v972_v18  ;;  %v2174_v20 = vpop.f32.mrb[1].mxu1  ;;  %v916_v21 = vpop.f32.mrb[0].mxu0 }
 0x1c0   : > { %v975_v22 = vpop.f32.mrb[2].mxu1  ;;  %v2166_v23 = vpop.f32.mrb[1].mxu0  ;;  %v1034_v25 = vpack.c.bf16 %v916_v21, %v916_v21 }
 0x1c1   : > { %1269 = vrot.lane.b32.xlu1 %v1035_v19, %s2687_s0  ;;  %1150 = vrot.lane.b32.xlu0 %v1035_v19, %s2688_s10  ;;  %v2175_v24 = vpop.f32.mrb[3].mxu1  ;;  %v1041_v26 = vsel %vm1036_vm6, %v1035_v19, 0  ;;  %v919_v27 = vpop.f32.mrb[2].mxu0 }
 0x1c2   : > { %2185 = vmatpush3.bf16.xpose.msra.mxu1 %v1041_v26  ;;  %v2167_v28 = vpop.f32.mrb[3].mxu0 }
 0x1c3   : > { %2196 = vmatprep.subr.bf16.mxu1 %v2685_v12 }
 0x1c5   : > { %1267 = vrot.lane.b32.xlu1 %v1034_v25, %s2687_s0  ;;  %1147 = vrot.lane.b32.xlu0 %v1034_v25, %s2688_s10 }
 0x1c7   : > { %v1028_v48 = vpop.f32.mrb[4].mxu0 }
 0x1c8   : > { %v3223_v49 = vpack.c.bf16 %v1028_v48, %v1028_v48  ;;  %v2182_v50 = vpop.f32.mrb[5].mxu0 }
 0x1c9   : > { %1385 = vrot.lane.b32.xlu1 %v1034_v25, %s2689_s21  ;;  %1387 = vrot.lane.b32.xlu0 %v1035_v19, %s2689_s21  ;;  %v1031_v51 = vpop.f32.mrb[6].mxu0 }
 0x1ca   : > { %2187 = vmatmul.mubr.msk.bf16.vlgmr.msra.gmra.mrb[4].mxu1 %vm1036_vm6, %v1034_v25  ;;  %v2183_v52 = vpop.f32.mrb[7].mxu0  ;;  %v1103_v53 = vsel %vm1101_vm8, %v3223_v49, 0 }
 0x1cb   : > { %2198 = vmatprep.mubr.msk.bf16.mxu1 %vm2686_vm4, %v2685_v12  ;;  %2191 = vmatpush3.bf16.msra.mxu0 %v1103_v53 }
 0x1cc   : > { %2202 = vmatprep.subr.bf16.mxu0 %v2685_v12 }
 0x233   : > { %v1151_v31 = vpop.permute.xlu0 %1150  ;;  %v1270_v33 = vpop.permute.xlu1 %1269 }
 0x234   : > { %v1156_v32 = vsel %vm1036_vm6, %v1151_v31, 0  ;;  %v1275_v35 = vsel %vm1036_vm6, %v1270_v33, 0 }
 0x235   : > { %2197 = vmatpush3.bf16.xpose.msra.mxu1 %v1156_v32 }
 0x236   : > { %2208 = vmatprep.subr.bf16.mxu1 %v2685_v12 }
 0x237   : > { %v1148_v34 = vpop.permute.xlu0 %1147  ;;  %v1268_v37 = vpop.permute.xlu1 %1267 }
 0x23b   : > { %v1388_v36 = vpop.permute.xlu0 %1387  ;;  %v1386_v39 = vpop.permute.xlu1 %1385 }
 0x23c   : > { %2199 = vmatmul.mubr.msk.bf16.vlgmr.msra.gmra.mrb[8].mxu1 %vm1036_vm6, %v1148_v34  ;;  %v1393_v38 = vsel %vm1036_vm6, %v1388_v36, 0 }
 0x23d   : > { %2209 = vmatpush3.bf16.xpose.msra.mxu1 %v1275_v35  ;;  %2210 = vmatprep.mubr.msk.bf16.mxu1 %vm2686_vm4, %v2685_v12 }
 0x23e   : > { %2220 = vmatprep.subr.bf16.mxu1 %v2685_v12 }
 0x244   : > { %2211 = vmatmul.mubr.msk.bf16.vlgmr.msra.gmra.mrb[12].mxu1 %vm1036_vm6, %v1268_v37 }
 0x245   : > { %2221 = vmatpush3.bf16.xpose.msra.mxu1 %v1393_v38  ;;  %2222 = vmatprep.mubr.msk.bf16.mxu1 %vm2686_vm4, %v2685_v12 }
 0x246   : > { %2232 = vmatprep.subr.bf16.mxu1 %v2685_v12 }
 0x24c   : > { %2223 = vmatmul.mubr.msk.bf16.vlgmr.msra.gmra.mrb[16].mxu1 %vm1036_vm6, %v1386_v39 }
 0x24d   : > { %2236 = vmatprep.mubr.msk.bf16.mxu1 %vm2686_vm4, %v2685_v12 }
 0x29d   : > { %v1077_v41 = vpop.f32.mrb[4].mxu1 }
 0x29e   : > { %v1083_v42 = vmul.f32 0.35355338, %v1077_v41  ;;  %v2188_v43 = vpop.f32.mrb[5].mxu1 }
 0x29f   : > { %v1080_v44 = vpop.f32.mrb[6].mxu1 }
 0x2a0   : > { %v2189_v45 = vpop.f32.mrb[7].mxu1  ;;  %v1084_v46 = vsel %vm842_vm7, -1e+09, %v1083_v42 }
 0x2a1   : > { %v1085_v47 = vsel %vm1036_vm6, %v1084_v46, -inf }
 0x2a2   : > { %1086 = vmax.xlane.f32.xlu0 %v1085_v47 }
 0x30f   : > { %v1192_v54 = vpop.f32.mrb[8].mxu1 }
 0x310   : > { %v1198_v55 = vmul.f32 0.35355338, %v1192_v54  ;;  %v2200_v56 = vpop.f32.mrb[9].mxu1 }
 0x311   : > { %v1195_v57 = vpop.f32.mrb[10].mxu1 }
 0x312   : > { %v2201_v58 = vpop.f32.mrb[11].mxu1  ;;  %v1199_v59 = vsel %vm842_vm7, -1e+09, %v1198_v55 }
 0x313   : > { %v1200_v60 = vsel %vm1036_vm6, %v1199_v59, -inf }
 0x314   : > { %1201 = vmax.xlane.f32.xlu1 %v1200_v60 }
 0x317   : > { %v1311_v61 = vpop.f32.mrb[12].mxu1 }
 0x318   : > { %v1317_v62 = vmul.f32 0.35355338, %v1311_v61  ;;  %v2212_v63 = vpop.f32.mrb[13].mxu1 }
 0x319   : > { %v1314_v0 = vpop.f32.mrb[14].mxu1  ;;  %v2394_v63 = vld [vmem:[%s3087_s2] sm:$0xff]  }
 0x31a   : > { %v2213_v1 = vpop.f32.mrb[15].mxu1  ;;  %v1318_v2 = vsel %vm842_vm7, -1e+09, %v1317_v62  ;;  %2233 = vmatpush3.bf16.msra.mxu1 %v2394_v63  ;;  %v2395_v0 = vld [vmem:[%s3087_s2 + $0x8] sm:$0xff]  }
 0x31b   : > { %v1319_v3 = vsel %vm1036_vm6, %v1318_v2, -inf  ;;  %2234 = vmatprep.subr.bf16.mxu1 %v2685_v12 }
 0x31c   : > { %1320 = vmax.xlane.f32.xlu0 %v1319_v3 }
 0x31e   : > { %2235 = vmatpush3.bf16.msra.mxu1 %v2395_v0 }
 0x31f   : > { %v1429_v4 = vpop.f32.mrb[16].mxu1  ;;  %2248 = vmatprep.subr.bf16.mxu1 %v2685_v12 }
 0x320   : > { %v1435_v5 = vmul.f32 0.35355338, %v1429_v4  ;;  %v2224_v6 = vpop.f32.mrb[17].mxu1 }
 0x321   : > { %v1432_v7 = vpop.f32.mrb[18].mxu1 }
 0x322   : > { %v2225_v8 = vpop.f32.mrb[19].mxu1  ;;  %v1436_v9 = vsel %vm842_vm7, -1e+09, %v1435_v5 }
 0x323   : > { %v1437_v10 = vsel %vm1036_vm6, %v1436_v9, -inf }
 0x324   : > { %1438 = vmax.xlane.f32.xlu0 %v1437_v10 }
 0x32f   : > { %v1087_v11 = vpop.xlane.xlu0 %1086 }
 0x330   : > { %v1088_v13 = vsub.f32 %v1084_v46, %v1087_v11 }
 0x332   : > { %v1089_v14 = vmul.f32 1.442695, %v1088_v13 }
 0x334   : > { %2402 = vpow2.f32 %v1089_v14 }
 0x33e   : > { %v2403_v16 = vpop.eup %2402 }
 0x33f   : > { %v1091_v17 = vsel %vm1036_vm6, %v2403_v16, 0.0 }
 0x340   : > { %1092 = vadd.xlane.f32.xlu1 %v1091_v17 }
 0x351   : > { %1213 = vrot.lane.b32.xlu1 %v3223_v49, %s2688_s10 }
 0x3a1   : > { %v1202_v18 = vpop.xlane.xlu1 %1201 }
 0x3a2   : > { %v1203_v19 = vsub.f32 %v1199_v59, %v1202_v18 }
 0x3a4   : > { %v1204_v20 = vmul.f32 1.442695, %v1203_v19 }
 0x3a6   : > { %2404 = vpow2.f32 %v1204_v20 }
 0x3a9   : > { %v1321_v21 = vpop.xlane.xlu0 %1320 }
 0x3aa   : > { %v1322_v22 = vsub.f32 %v1318_v2, %v1321_v21 }
 0x3ac   : > { %v1323_v23 = vmul.f32 1.442695, %v1322_v22 }
 0x3ae   : > { %2406 = vpow2.f32 %v1323_v23 }
 0x3b0   : > { %v2405_v24 = vpop.eup %2404 }
 0x3b1   : > { %v1439_v25 = vpop.xlane.xlu0 %1438  ;;  %v1206_v26 = vsel %vm1036_vm6, %v2405_v24, 0.0 }
 0x3b2   : > { %v1440_v27 = vsub.f32 %v1436_v9, %v1439_v25  ;;  %1207 = vadd.xlane.f32.xlu0 %v1206_v26 }
 0x3b4   : > { %v1441_v28 = vmul.f32 1.442695, %v1440_v27 }
 0x3b6   : > { %2408 = vpow2.f32 %v1441_v28 }
 0x3b8   : > { %v2407_v29 = vpop.eup %2406 }
 0x3b9   : > { %v1325_v30 = vsel %vm1036_vm6, %v2407_v29, 0.0 }
 0x3ba   : > { %1326 = vadd.xlane.f32.xlu1 %v1325_v30  ;;  %v2397_v30 = vld [vmem:[%s3093_s13 + $0x8] sm:$0xff]  }
 0x3c0   : > { %v2409_v31 = vpop.eup %2408 }
 0x3c1   : > { %v1443_v32 = vsel %vm1036_vm6, %v2409_v31, 0.0 }
 0x3c2   : > { %1444 = vadd.xlane.f32.xlu0 %v1443_v32 }
 0x3cb   : > { %1449 = vrot.lane.b32.xlu1 %v3223_v49, %s2689_s21 }
 0x3cd   : > { %v1093_v33 = vpop.xlane.xlu1 %1092 }
 0x3ce   : > { %2410 = vrcp.f32 %v1093_v33 }
 0x3d1   : > { %v1214_v35 = vpop.permute.xlu1 %1213 }
 0x3d2   : > { %v1219_v38 = vsel %vm1101_vm8, %v1214_v35, 0 }
 0x3d8   : > { %v2411_v34 = vpop.eup %2410  ;;  %1331 = vrot.lane.b32.xlu0 %v3223_v49, %s2687_s0 }
 0x3d9   : > { %v1095_v36 = vmul.f32 %v2411_v34, %v2403_v16  ;;  %v2096_v16 = vld [vmem:[%s3513_s11] ss:$0 sm:$0xff] }
 0x3db   : > { %v1096_v37 = vpack.c.bf16 %v1095_v36, %v1095_v36 }
 0x3dd   : > { %2193 = vmatmul.mubr.msk.bf16.vlgmr.msra.gmra.mrb[8].mxu0 %vm1036_vm6, %v1096_v37 }
 0x3de   : > { %2203 = vmatpush3.bf16.msra.mxu0 %v1219_v38  ;;  %2204 = vmatprep.mubr.msk.bf16.mxu0 %vm2686_vm4, %v2685_v12 }
 0x3df   : > { %2214 = vmatprep.subr.bf16.mxu0 %v2685_v12 }
 0x43f   : > { %v1208_v39 = vpop.xlane.xlu0 %1207 }
 0x440   : > { %2412 = vrcp.f32 %v1208_v39 }
 0x447   : > { %v1327_v40 = vpop.xlane.xlu1 %1326 }
 0x448   : > { %2414 = vrcp.f32 %v1327_v40 }
 0x44a   : > { %v2413_v41 = vpop.eup %2412 }
 0x44b   : > { %v1210_v42 = vmul.f32 %v2413_v41, %v2405_v24  ;;  %v1450_v49 = vpop.permute.xlu1 %1449  ;;  %v2100_v41 = vld [vmem:[%s3516_s9] ss:$0 sm:$0xff] }
 0x44c   : > { %v1455_v51 = vsel %vm1101_vm8, %v1450_v49, 0 }
 0x44d   : > { %v1211_v43 = vpack.c.bf16 %v1210_v42, %v1210_v42 }
 0x44f   : > { %v1445_v44 = vpop.xlane.xlu0 %1444  ;;  %2205 = vmatmul.mubr.msk.bf16.vlgmr.msra.gmra.mrb[12].mxu0 %vm1036_vm6, %v1211_v43  ;;  %v2101_v43 = vld [vmem:[%s796_s17] ss:$0 sm:$0xff] }
 0x450   : > { %2416 = vrcp.f32 %v1445_v44  ;;  %2216 = vmatprep.mubr.msk.bf16.mxu0 %vm2686_vm4, %v2685_v12 }
 0x452   : > { %v2415_v45 = vpop.eup %2414 }
 0x453   : > { %v1329_v46 = vmul.f32 %v2415_v45, %v2407_v29  ;;  %v1332_v47 = vpop.permute.xlu0 %1331  ;;  %v2396_v29 = vld [vmem:[%s3093_s13] sm:$0xff]   ;;  %s3514_s13 = sld [smem:[#allocation34_spill]] }
 0x454   : > { %v1337_v48 = vsel %vm1101_vm8, %v1332_v47, 0  ;;  %v2400_v47 = vld [vmem:[%s3142_s16 + $0x10] sm:$0xff]  }
 0x455   : > { %2215 = vmatpush3.bf16.msra.mxu0 %v1337_v48  ;;  %v1330_v50 = vpack.c.bf16 %v1329_v46, %v1329_v46  ;;  %v2401_v48 = vld [vmem:[%s3142_s16 + $0x18] sm:$0xff]  }
 0x456   : > { %2226 = vmatprep.subr.bf16.mxu0 %v2685_v12 }
 0x458   : > { %2217 = vmatmul.mubr.msk.bf16.vlgmr.msra.gmra.mrb[16].mxu0 %vm1036_vm6, %v1330_v50 }
 0x459   : > { %2227 = vmatpush3.bf16.msra.mxu0 %v1455_v51  ;;  %2228 = vmatprep.mubr.msk.bf16.mxu0 %vm2686_vm4, %v2685_v12  ;;  %s3518_s5 = scalar_lea.vmem [#allocation10], %s3514_s13 }
 0x45a   : > { %v2417_v52 = vpop.eup %2416  ;;  %2240 = vmatprep.subr.bf16.mxu0 %v2685_v12  ;;  %v2102_v49 = vld [vmem:[%s3518_s5] ss:$0 sm:$0xff] }
 0x45b   : > { %v1447_v53 = vmul.f32 %v2417_v52, %v2409_v31  ;;  %v2398_v31 = vld [vmem:[%s3142_s16] sm:$0xff]  }
 0x45d   : > { %v1448_v54 = vpack.c.bf16 %v1447_v53, %v1447_v53 }
 0x460   : > { %2229 = vmatmul.mubr.msk.bf16.vlgmr.msra.gmra.mrb[20].mxu0 %vm1036_vm6, %v1448_v54 }
 0x461   : > { %2244 = vmatprep.mubr.msk.bf16.mxu0 %vm2686_vm4, %v2685_v12  ;;  %2241 = vmatpush3.bf16.msra.mxu0 %v2396_v29 }
 0x462   : > { %2242 = vmatprep.subr.bf16.mxu0 %v2685_v12 }
 0x465   : > { %2243 = vmatpush3.bf16.msra.mxu0 %v2397_v30 }
 0x4b0   : > { %v1139_v55 = vpop.f32.mrb[8].mxu0 }
 0x4b1   : > { %1145 = vst.msk [vmem:[#allocation3] sm:$0xff] %vm1036_vm6, %v1139_v55  ;;  %v2194_v56 = vpop.f32.mrb[9].mxu0 }
 0x4b2   : > { %v1142_v57 = vpop.f32.mrb[10].mxu0 }
 0x4b3   : > { %v2195_v58 = vpop.f32.mrb[11].mxu0  ;;  %v2106_v57 = vld [vmem:[%s804_s23] ss:$0 sm:$0xff]  ;;  %s3521_s23 = sld [smem:[#allocation32_spill]] }
 0x4b9   : > { %p3525_p1 = scmp.ne.s32.totalorder %s3521_s23, 0 }
 0x522   : > { %v1255_v59 = vpop.f32.mrb[12].mxu0 }
 0x523   : > { %1262 = vrot.lane.b32.xlu1 %v1255_v59, %s2690_s19  ;;  %v2206_v60 = vpop.f32.mrb[13].mxu0 }
 0x524   : > { %v1258_v61 = vpop.f32.mrb[14].mxu0 }
 0x525   : > { %v2207_v62 = vpop.f32.mrb[15].mxu0 }
 0x52b   : > { %v1373_v1 = vpop.f32.mrb[16].mxu0 }
 0x52c   : > { %1380 = vrot.lane.b32.xlu0 %v1373_v1, %s2691_s28  ;;  %v2218_v2 = vpop.f32.mrb[17].mxu0 }
 0x52d   : > { %v1376_v3 = vpop.f32.mrb[18].mxu0 }
 0x52e   : > { %v2219_v4 = vpop.f32.mrb[19].mxu0 }
 0x533   : > { %v1491_v5 = vpop.f32.mrb[20].mxu0 }
 0x534   : > { %1498 = vrot.lane.b32.xlu1 %v1491_v5, %s2692_s15  ;;  %v2230_v6 = vpop.f32.mrb[21].mxu0  ;;  %s1795_s15 = sshll.u32 %s3158_s27, 4  ;;  %s3325_s15 = int_to_ptr.vmem [resolvable:$true] %s1795_s15 }
 0x535   : > { %v1494_v7 = vpop.f32.mrb[22].mxu0  ;;  %s2546_s13 = scalar_lea.vmem %s3325_s15, 128 }
 0x536   : > { %v2231_v8 = vpop.f32.mrb[23].mxu0  ;;  %p2547_p9 = scmp.ne.s32.totalorder %s3325_s15, %s2546_s13 }
 0x538   : > { %p2548_p7 = pnand %p2547_p9, %p3525_p1 }
 0x53a   : > { %p2549_p4 = pneg %p2548_p7 }
 0x595   : > { %v1263_v9 = vpop.permute.xlu1 %1262 }
 0x596   : > { %1266 = vst.msk [vmem:[#allocation3] sm:$0xff] %vm1265_vm9, %v1263_v9 }
 0x59e   : > { %v1381_v10 = vpop.permute.xlu0 %1380 }
 0x59f   : > { %1384 = vst.msk [vmem:[#allocation3] sm:$0xff] %vm1383_vm10, %v1381_v10 }
 0x5a6   : > { %v1499_v11 = vpop.permute.xlu1 %1498 }
 0x5a7   : > { %1502 = vst.msk [vmem:[#allocation3] sm:$0xff] %vm1501_vm11, %v1499_v11 }
 0x5ae   : > { %v1503_v13 = vld [vmem:[#allocation3] sm:$0xff] }
 0x5af   : > { %v1504_v14 = vpack.c.bf16 %v1503_v13, %v1503_v13 }
 0x5b1   : > { %2237 = vmatmul.mubr.msk.bf16.vlgmr.msra.gmra.mrb[20].mxu1 %vm878_vm5, %v1504_v14 }
 0x5b2   : > { %2256 = vmatprep.mubr.msk.bf16.mxu1 %vm2686_vm4, %v2685_v12  ;;  %2249 = vmatpush3.bf16.msra.mxu1 %v2398_v31 }
 0x5b3   : > { %2250 = vmatprep.subr.bf16.mxu1 %v2685_v12 }
 0x684   : > { %v1564_v17 = vpop.f32.mrb[20].mxu1 }
 0x685   : > { %v1565_v18 = vadd.f32 %v2096_v16, %v1564_v17  ;;  %v2238_v19 = vpop.f32.mrb[21].mxu1  ;;  %v2112_v16 = vld [vmem:[%s807_s18] ss:$0 sm:$0xff]  ;;  %s1782_s18 = scalar_lea.sflag [#allocation6], %s3070_s14 }
 0x686   : > { %v1567_v20 = vpop.f32.mrb[22].mxu1 }
 0x687   : > { %v2239_v21 = vpop.f32.mrb[23].mxu1  ;;  %v1570_v22 = vadd.f32 %v1565_v18, %v3172_v15  ;;  %v2399_v15 = vld [vmem:[%s3142_s16 + $0x8] sm:$0xff]   ;;  %s3520_s16 = sld [smem:[#allocation23_spill]]  ;;  %v2113_v18 = vld [vmem:[%s810_s29] ss:$0 sm:$0xff]  ;;  %s2550_s29 = sshll.u32 %s2693_s24, 4  ;;  %s2551_s29 = int_to_ptr.vmem [resolvable:$false] %s2550_s29 }
 0x688   : > { %2251 = vmatpush3.bf16.msra.mxu1 %v2399_v15  ;;  %s2552_s25 = scalar_lea.vmem %s2551_s29, 256  ;;  %p2553_p8 = scmp.lt.s32.totalorder %s3325_s15, %s2551_s29 }
 0x689   : > { %v1571_v23 = vsel %vm878_vm5, %v1570_v22, 0.0  ;;  %2252 = vmatprep.subr.bf16.mxu1 %v2685_v12  ;;  %p2554_p11 = scmp.lt.s32.totalorder %s2552_s25, %s2546_s13 }
 0x68a   : > { %1572 = vadd.xlane.f32.xlu0 %v1571_v23 }
 0x68b   : > { %p2555_p2 = por %p2554_p11, %p2553_p8 }
 0x68c   : > { %2253 = vmatpush3.bf16.msra.mxu1 %v2400_v47 }
 0x68d   : > { %2254 = vmatprep.subr.bf16.mxu1 %v2685_v12  ;;  %s2115_s28 = sshll.u32 %s3520_s16, 7  ;;  %p2556_p5 = pnand %p2555_p2, %p2549_p4 }
 0x68e   : > { %s3323_s11 = scalar_lea.hbm %s3524_s4, %s2115_s28 }
 0x690   : > { %2255 = vmatpush3.bf16.msra.mxu1 %v2401_v48 }
 0x717   : > { %v1573_v24 = vpop.xlane.xlu0 %1572 }
 0x718   : > { %v1575_v25 = vmul.f32 0.03125, %v1573_v24 }
 0x71a   : > { %v1576_v26 = vsub.f32 %v1570_v22, %v1575_v25 }
 0x71c   : > { %v1577_v27 = vmul.f32 %v1576_v26, %v1576_v26 }
 0x71e   : > { %v1578_v28 = vsel %vm878_vm5, %v1577_v27, 0.0 }
 0x71f   : > { %1579 = vadd.xlane.f32.xlu1 %v1578_v28 }
 0x7ac   : > { %v1580_v32 = vpop.xlane.xlu1 %1579 }
 0x7ad   : > { %v1582_v33 = vmul.f32 0.032258064, %v1580_v32 }
 0x7af   : > { %2418 = vrsqrt.f32 %v1582_v33  ;;  %vm1585_vm12 = vcmp.eq.f32.partialorder %v1582_v33, inf  ;;  %v1588_v36 = vand.u32 2147483648, %v1582_v33  ;;  %vm1587_vm13 = vcmp.eq.f32.partialorder %v1582_v33, 0.0 }
 0x7b9   : > { %v2419_v34 = vpop.eup %2418 }
 0x7ba   : > { %v1584_v35 = vmul.f32 %v2419_v34, %v1582_v33 }
 0x7bc   : > { %v1586_v37 = vsel %vm1585_vm12, %v1582_v33, %v1584_v35 }
 0x7bd   : > { %v1589_v38 = vsel %vm1587_vm13, %v1588_v36, %v1586_v37 }
 0x7be   : > { %v1590_v39 = vadd.f32 1e-06, %v1589_v38 }
 0x7c0   : > { %2420 = vrcp.f32 %v1590_v39 }
 0x7ca   : > { %v2421_v40 = vpop.eup %2420 }
 0x7cb   : > { %v1592_v42 = vmul.f32 %v2421_v40, %v1576_v26 }
 0x7cd   : > { %v1599_v44 = vmul.f32 %v2100_v41, %v1592_v42 }
 0x7cf   : > { %v1606_v45 = vadd.f32 %v2101_v43, %v1599_v44 }
 0x7d1   : > { %v1607_v46 = vpack.c.bf16 %v1606_v45, %v1606_v45 }
 0x7d3   : > { %2245 = vmatmul.mubr.msk.bf16.vlgmr.msra.gmra.mrb[24].mxu0 %vm878_vm5, %v1607_v46 }
 0x8a6   : > { %v1663_v50 = vpop.f32.mrb[24].mxu0 }
 0x8a7   : > { %v1664_v51 = vadd.f32 %v2102_v49, %v1663_v50  ;;  %v2246_v52 = vpop.f32.mrb[25].mxu0 }
 0x8a8   : > { %v1666_v53 = vpop.f32.mrb[26].mxu0 }
 0x8a9   : > { %v1669_v54 = vmax.f32 %v1664_v51, 0.0  ;;  %v2247_v55 = vpop.f32.mrb[27].mxu0 }
 0x8ab   : > { %v1670_v56 = vpack.c.bf16 %v1669_v54, %v1669_v54 }
 0x8ad   : > { %2257 = vmatmul.mubr.msk.bf16.vlgmr.msra.gmra.mrb[24].mxu1 %vm1701_vm14, %v1670_v56 }
 0x980   : > { %v1739_v58 = vpop.f32.mrb[24].mxu1 }
 0x981   : > { %v1740_v12 = vadd.f32 %v2106_v57, %v1739_v58  ;;  %v2258_v59 = vpop.f32.mrb[25].mxu1 }
 0x982   : > { %v1742_v60 = vpop.f32.mrb[26].mxu1 }
 0x983   : > { %v2259_v61 = vpop.f32.mrb[27].mxu1  ;;  %v1745_v62 = vadd.f32 %v1740_v12, %v1606_v45 }
 0x985   : > { %v1746_v63 = vsel %vm878_vm5, %v1745_v62, 0.0 }
 0x986   : > { %1747 = vadd.xlane.f32.xlu0 %v1746_v63 }
 0xa13   : > { %v1748_v0 = vpop.xlane.xlu0 %1747 }
 0xa14   : > { %v1749_v1 = vmul.f32 0.03125, %v1748_v0 }
 0xa16   : > { %v1750_v2 = vsub.f32 %v1745_v62, %v1749_v1 }
 0xa18   : > { %v1751_v3 = vmul.f32 %v1750_v2, %v1750_v2 }
 0xa1a   : > { %v1752_v4 = vsel %vm878_vm5, %v1751_v3, 0.0 }
 0xa1b   : > { %1753 = vadd.xlane.f32.xlu0 %v1752_v4 }
 0xaa8   : > { %v1754_v5 = vpop.xlane.xlu0 %1753 }
 0xaa9   : > { %v1755_v6 = vmul.f32 0.032258064, %v1754_v5 }
 0xaab   : > { %2422 = vrsqrt.f32 %v1755_v6  ;;  %vm1758_vm15 = vcmp.eq.f32.partialorder %v1755_v6, inf  ;;  %v1761_v9 = vand.u32 2147483648, %v1755_v6  ;;  %vm1760_vm0 = vcmp.eq.f32.partialorder %v1755_v6, 0.0 }
 0xab5   : > { %v2423_v7 = vpop.eup %2422 }
 0xab6   : > { %v1757_v8 = vmul.f32 %v2423_v7, %v1755_v6 }
 0xab8   : > { %v1759_v10 = vsel %vm1758_vm15, %v1755_v6, %v1757_v8 }
 0xab9   : > { %v1762_v11 = vsel %vm1760_vm0, %v1761_v9, %v1759_v10 }
 0xaba   : > { %v1763_v13 = vadd.f32 1e-06, %v1762_v11 }
 0xabc   : > { %2424 = vrcp.f32 %v1763_v13 }
 0xac6   : > { %v2425_v14 = vpop.eup %2424 }
 0xac7   : > { %v1765_v17 = vmul.f32 %v2425_v14, %v1750_v2 }
 0xac9   : > { %v1772_v19 = vmul.f32 %v2112_v16, %v1765_v17 }
 0xacb   : > { %v1779_v20 = vadd.f32 %v2113_v18, %v1772_v19 }
 0xacd   : > { %1780 = vst.msk [vmem:[%s3158_s27] sm:$0xff] %vm878_vm5, %v1779_v20 }
 0xace   : > { %2559 = shalt.err (!%p2556_p5)
}
 0xacf   : > { %s2560_s14 = scalar_lea.hbm %s3323_s11, 128  ;;  %s2564_s7 = scalar_lea.hbm %s3524_s4, 256 }
 0xad0   : > { %p2561_p12 = scmp.ne.s32.totalorder %s3323_s11, %s2560_s14  ;;  %p2565_p13 = scmp.lt.u32.totalorder %s3323_s11, %s3524_s4 }
 0xad1   : > { %p2566_p3 = scmp.lt.u32.totalorder %s2564_s7, %s2560_s14  ;;  %p2568_p9 = scmp.lt.u32.totalorder %s2560_s14, %s3323_s11 }
 0xad2   : > { %p2562_p6 = pnand %p2561_p12, %p3525_p1 }
 0xad3   : > { %p2567_p10 = por %p2566_p3, %p2565_p13 }
 0xad4   : > { %p2563_p0 = pneg %p2562_p6 }
 0xad5   : > { %p2569_p7 = por %p2568_p9, %p2567_p10 }
 0xad7   : > { %p2570_p4 = pnand %p2569_p7, %p2563_p0 }
 0xad9   : > { %2573 = shalt.err (!%p2570_p4)
}
 0xada   : > { %2268 = dma.vmem_to_hbm [thread:$0]  (%p3525_p1), %s3325_s15, 128, %s3323_s11, %s1782_s18  }
 0xadb PF: > { %s3526_s22 = sld [smem:[#allocation26_spill]]  ;;  %s3527_s26 = sld [smem:[#allocation19_spill]] }
 0xadc   : > { %s3528_s5 = sld [smem:[#allocation33_spill]] }
 0xae1   : > { %p2288_p8 = scmp.ge.s32.totalorder %s3526_s22, 2  ;;  %s1807_s17 = sand.u32 1, %s3527_s26  }
 0xae2   : > { %p3529_p11 = scmp.ne.s32.totalorder %s3528_s5, 0  ;;  %s1808_s12 = scalar_lea.sflag [#allocation6], %s1807_s17 }
 0xae4   : > { %p2284_p2 = pnand %p2288_p8, %p3529_p11 }
 0xae6   : > { %2631 = dma.done.wait (!%p2284_p2), %s1808_s12, 128  }
 0xae7   : > { %2633 = vsyncadd (!%p2284_p2), %s1808_s12, 4294967168  ;;  %s37_s28 = sadd.s32 1, %s3526_s22   ;;  %s3530_s18 = sld [smem:[#allocation17_spill]] }
 0xae8   : > { %p34_p5 = scmp.ge.s32.totalorder %s37_s28, 6   ;;  %s3531_s19 = sld [smem:[#allocation18_spill]] }
 0xae9   : > { %s3532_s20 = sld [smem:[#allocation29_spill]]  ;;  %s3533_s21 = sld [smem:[#allocation20_spill]] }
 0xaea   : > { %s3534_s22 = sld [smem:[#allocation21_spill]]  ;;  %s3535_s23 = sld [smem:[#allocation31_spill]] }
 0xaeb   : > { %s3536_s24 = sld [smem:[#allocation24_spill]]  ;;  %s3537_s25 = sld [smem:[#allocation25_spill]] }
 0xaec   : > { %s3538_s26 = sld [smem:[#allocation27_spill]]  ;;  %s3539_s27 = sld [smem:[#allocation28_spill]] }
 0xaed   :  { %36 = sbr.rel (!%p34_p5) target bundleno = 30 (0x1e), region = 199 }
 0xaf4   :  { %1813 = vsyncpa [#allocation5], 1 }
 0xaf5   :  { %1815 = vsyncpa [#allocation5 + $0x1], 1 }
 0xaf6   :  { %1816 = vsyncpa [#allocation8], 1 }
 0xaf7   :  { %1818 = vsyncpa [#allocation8 + $0x1], 1 }
 0xaf8   :  { %1819 = vsyncpa [#allocation11], 1 }
 0xaf9   :  { %1821 = vsyncpa [#allocation11 + $0x1], 1 }
 0xafa   :  { %1822 = vsyncpa [#allocation6], 1 }
 0xafb   :  { %1824 = vsyncpa [#allocation6 + $0x1], 1 }

</bundles_post_ra>
